<compile_context>
chip_gen: v7x
topology: tpu7x:2x2x1
jax: 0.10.0
libtpu: 0.0.40
codegen_flags: <defaults>
</compile_context>

<pallas_src>
import jax
import jax.numpy as jnp
from jax.experimental import pallas as pl
from jax.experimental.pallas import tpu as pltpu

# ----------------------------- config ---------------------------------------
B = 2                      # batch
C = 3                      # image channels
IMG = 16                   # image height = width
P = 8                      # patch size (conv kernel = stride = P)
N_PATCH = (IMG // P) ** 2  # 4 image tokens per image
PATCH_DIM = C * P * P      # 192
D_V = 32                   # vision hidden dim
N_HEAD_V = 4
HEAD_V = D_V // N_HEAD_V
MLP_V = 64
H = 32                     # language hidden_size (embedding_dim of new LayerNorm)
N_HEAD = 4
HEAD_DIM = H // N_HEAD
MLP_LM = 64
VOCAB = 128                # lane-dense vocab so the logits store is unmasked
L_TXT = 8                  # text sequence length
T = N_PATCH + L_TXT        # combined sequence length (12)
BNP = B * N_PATCH          # 8  flattened image tokens
BL = B * L_TXT             # 16 flattened text tokens
BT = B * T                 # 24 flattened combined tokens
NEG_INF = -1e9
_PATCH_SHIFT = N_PATCH.bit_length() - 1   # log2(N_PATCH); power of two by construction


# ----------------------------- in-kernel math helpers ------------------------
def _mxu(a, b):
    """MXU matmul: bf16 operands, f32 accumulation (native path on v6e/v7x)."""
    return jnp.dot(a.astype(jnp.bfloat16), b.astype(jnp.bfloat16),
                   preferred_element_type=jnp.float32)


def _mxu_nt(a, b):
    """a @ b.T without materializing a transpose (contract both on dim 1)."""
    return jax.lax.dot_general(a.astype(jnp.bfloat16), b.astype(jnp.bfloat16),
                               (((1,), (1,)), ((), ())),
                               preferred_element_type=jnp.float32)


def _layernorm(x, g, b, eps):
    mean = jnp.mean(x, axis=-1, keepdims=True)
    var = jnp.mean((x - mean) ** 2, axis=-1, keepdims=True)
    return (x - mean) * jax.lax.rsqrt(var + eps) * g + b


def _rmsnorm(x, w, eps=1e-6):
    var = jnp.mean(x * x, axis=-1, keepdims=True)
    return x * jax.lax.rsqrt(var + eps) * (1.0 + w)


def _softmax(s):
    s = s - jnp.max(s, axis=-1, keepdims=True)
    p = jnp.exp(s)
    # EUP reciprocal instead of a VALU divide
    return p * pl.reciprocal(jnp.sum(p, axis=-1, keepdims=True), approx=True)


def _mha(q, k, v, o_w, add_mask, n_heads, scale):
    """Multi-head attention fused with the output projection.

    Heads are static lane slices.  Per-head contexts are concatenated along lanes
    (one cheap XLU op) and the output projection is a SINGLE matmul with full
    contraction depth instead of n_heads shallow matmuls + VALU adds.
    """
    hd = q.shape[-1] // n_heads
    ctxs = []
    for hh in range(n_heads):
        sl = slice(hh * hd, (hh + 1) * hd)
        s = _mxu_nt(q[:, sl], k[:, sl]) * scale + add_mask
        p_attn = _softmax(s)
        ctxs.append(_mxu(p_attn, v[:, sl]))
    ctx = jnp.concatenate(ctxs, axis=-1)          # [rows, D] lane concat
    return _mxu(ctx, o_w)


# ----------------------------- single fused kernel ---------------------------
def _fused_kernel(patch_ref, ids_ref, lm_mask_ref,
                  patch_w_ref, pos_ref, v_ln_ref, v_qkv_w_ref, v_qkv_b_ref,
                  v_o_w_ref, v_fc1_w_ref, v_fc1_b_ref, v_fc2_w_ref, v_bias_ref,
                  proj_w_ref, proj_b_ref,
                  embed_ref, lm_norms_ref, lm_qkv_w_ref, lm_o_w_ref,
                  lm_gate_w_ref, lm_up_w_ref, lm_down_w_ref,
                  out_ref):
    # ---------- vision tower (batch flattened into rows) + projector ----------
    x = _mxu(patch_ref[...], patch_w_ref[...]) + v_bias_ref[0:1, :]       # [BNP, D_V]
    x = x + jnp.concatenate([pos_ref[...]] * B, axis=0)                   # + pos embed / image

    # block-diagonal bidirectional mask: patches attend only within their own image
    r = jax.lax.broadcasted_iota(jnp.int32, (BNP, BNP), 0)
    c = jax.lax.broadcasted_iota(jnp.int32, (BNP, BNP), 1)
    same_img = jnp.right_shift(r, _PATCH_SHIFT) == jnp.right_shift(c, _PATCH_SHIFT)
    v_mask = jnp.where(same_img, 0.0, NEG_INF)

    # encoder block: x = x + attn(LN(x))          (SigLIP LayerNorm eps = 1e-6)
    h = _layernorm(x, v_ln_ref[0:1, :], v_ln_ref[1:2, :], 1e-6)
    qkv = _mxu(h, v_qkv_w_ref[...]) + v_qkv_b_ref[...]
    q, k, v = qkv[:, :D_V], qkv[:, D_V:2 * D_V], qkv[:, 2 * D_V:]
    x = x + _mha(q, k, v, v_o_w_ref[...], v_mask, N_HEAD_V, HEAD_V ** -0.5) + v_bias_ref[1:2, :]

    # encoder block: x = x + mlp(LN(x))
    h = _layernorm(x, v_ln_ref[2:3, :], v_ln_ref[3:4, :], 1e-6)
    h = jax.nn.gelu(_mxu(h, v_fc1_w_ref[...]) + v_fc1_b_ref[...], approximate=True)
    x = x + _mxu(h, v_fc2_w_ref[...]) + v_bias_ref[2:3, :]

    # post layernorm (last_hidden_state) + multi_modal_projector
    h = _layernorm(x, v_ln_ref[4:5, :], v_ln_ref[5:6, :], 1e-6)
    img = _mxu(h, proj_w_ref[...]) + proj_b_ref[...]                      # [BNP, H]

    # ---------- text token embeddings: one-hot(ids) @ embed (in-kernel gather) -
    ids = ids_ref[...]                                                     # [BL, 1] int32
    one_hot = (jax.lax.broadcasted_iota(jnp.int32, (BL, VOCAB), 1)
               == ids).astype(jnp.bfloat16)
    txt = jnp.dot(one_hot, embed_ref[...].astype(jnp.bfloat16),
                  preferred_element_type=jnp.float32)                      # [BL, H]

    # ---------- interleave [image tokens ; text tokens] per batch -> [BT, H] ---
    pieces = []
    for bb in range(B):
        pieces.append(img[bb * N_PATCH:(bb + 1) * N_PATCH, :])
        pieces.append(txt[bb * L_TXT:(bb + 1) * L_TXT, :])
    x = jnp.concatenate(pieces, axis=0)                                    # [BT, H]

    # ---------- new trainable LayerNorm added by the fine-tune wrapper ---------
    x = _layernorm(x, lm_norms_ref[0:1, :], lm_norms_ref[1:2, :], 1e-5)

    # Gemma scales input embeddings by sqrt(hidden_size)
    h = x * (float(H) ** 0.5)

    # additive block-diagonal causal + key-padding mask, prebuilt in the wrapper
    add_mask = lm_mask_ref[...]                                            # [BT, BT]

    # ---------- Gemma decoder layer: self-attention (bias-free projections) ----
    residual = h
    hn = _rmsnorm(h, lm_norms_ref[2:3, :])
    qkv = _mxu(hn, lm_qkv_w_ref[...])
    q, k, v = qkv[:, :H], qkv[:, H:2 * H], qkv[:, 2 * H:]
    # TODO(synk): Gemma rotary position embeddings (RoPE) omitted in this synthetic kernel.
    h = residual + _mha(q, k, v, lm_o_w_ref[...], add_mask, N_HEAD, HEAD_DIM ** -0.5)

    # ---------- Gemma decoder layer: GeGLU MLP ----------------------------------
    residual = h
    hn = _rmsnorm(h, lm_norms_ref[3:4, :])
    g = jax.nn.gelu(_mxu(hn, lm_gate_w_ref[...]), approximate=True)
    u = _mxu(hn, lm_up_w_ref[...])
    h = residual + _mxu(g * u, lm_down_w_ref[...])

    # ---------- final RMSNorm + tied lm_head (embed untransposed) ---------------
    # Note: fully-padded query rows produce uniform-attention garbage logits; they are
    # excluded from the loss via the -100 labels and must not be consumed downstream.
    hn = _rmsnorm(h, lm_norms_ref[4:5, :])
    out_ref[...] = _mxu_nt(hn, embed_ref[...]).astype(out_ref.dtype)       # [BT, VOCAB]


# ----------------------------- pallas_call wrapper ----------------------------
def _full_spec(shape):
    """Full-array VMEM-resident block (single grid step)."""
    zeros = (0,) * len(shape)
    return pl.BlockSpec(tuple(shape), lambda i, z=zeros: z)


_WEIGHT_ORDER = ("patch_w", "pos_embed", "v_ln", "v_qkv_w", "v_qkv_b",
                 "v_o_w", "v_fc1_w", "v_fc1_b", "v_fc2_w", "v_bias_dv",
                 "proj_w", "proj_b",
                 "embed", "lm_norms", "lm_qkv_w", "lm_o_w",
                 "lm_gate_w", "lm_up_w", "lm_down_w")


def pallas_paligemma_forward(p, patches, ids_col, lm_mask):
    inputs = [patches, ids_col, lm_mask] + [p[name] for name in _WEIGHT_ORDER]
    return pl.pallas_call(
        _fused_kernel,
        out_shape=jax.ShapeDtypeStruct((BT, VOCAB), jnp.float32),
        grid=(1,),                      # batch flattened into rows -> single grid step
        in_specs=[_full_spec(a.shape) for a in inputs],
        out_specs=_full_spec((BT, VOCAB)),
        compiler_params=pltpu.CompilerParams(
            dimension_semantics=("arbitrary",)),   # single step; no megacore split needed
    )(*inputs)


# ----------------------------- parameters ------------------------------------
def init_params(key):
    keys = iter(jax.random.split(key, 16))

    def w(shape, scale=0.02, dtype=jnp.bfloat16):
        return (scale * jax.random.normal(next(keys), shape, dtype=jnp.float32)).astype(dtype)

    p = {}
    # vision tower (SigLIP-style, 1 encoder block) — matmul weights bf16, QKV merged
    p["patch_w"] = w((PATCH_DIM, D_V))
    p["pos_embed"] = w((N_PATCH, D_V), dtype=jnp.float32)
    # packed LayerNorm params: rows = ln1_g, ln1_b, ln2_g, ln2_b, ln_post_g, ln_post_b
    p["v_ln"] = jnp.stack([jnp.ones(D_V), jnp.zeros(D_V), jnp.ones(D_V),
                           jnp.zeros(D_V), jnp.ones(D_V), jnp.zeros(D_V)]).astype(jnp.float32)
    p["v_qkv_w"] = w((D_V, 3 * D_V))
    p["v_qkv_b"] = jnp.zeros((1, 3 * D_V), jnp.float32)
    p["v_o_w"] = w((D_V, D_V))
    p["v_fc1_w"] = w((D_V, MLP_V))
    p["v_fc1_b"] = jnp.zeros((1, MLP_V), jnp.float32)
    p["v_fc2_w"] = w((MLP_V, D_V))
    # packed D_V-wide biases: rows = patch_b, attn_out_b, fc2_b
    p["v_bias_dv"] = jnp.zeros((3, D_V), jnp.float32)
    # multi_modal_projector (trainable in the wrapper)
    p["proj_w"] = w((D_V, H))
    p["proj_b"] = jnp.zeros((1, H), jnp.float32)
    # language_model.model.embed_tokens (trainable; tied lm_head; gathered in-kernel)
    p["embed"] = w((VOCAB, H))
    # packed norms: rows = new_ln_g, new_ln_b, rms_in, rms_post, rms_final
    # (Gemma RMSNorm stores w with out = x*(1+w), so zero-init)
    p["lm_norms"] = jnp.stack([jnp.ones(H), jnp.zeros(H), jnp.zeros(H),
                               jnp.zeros(H), jnp.zeros(H)]).astype(jnp.float32)
    # Gemma decoder layer — merged QKV, bias-free projections
    p["lm_qkv_w"] = w((H, 3 * H))
    p["lm_o_w"] = w((H, H))
    p["lm_gate_w"] = w((H, MLP_LM))
    p["lm_up_w"] = w((H, MLP_LM))
    p["lm_down_w"] = w((MLP_LM, H))
    return p


# ----------------------------- forward ----------------------------------------
def _build_lm_additive_mask(combined_mask):
    """Block-diagonal causal + key-padding additive mask over the flattened B*T rows."""
    b = combined_mask.shape[0]
    batch_of = jnp.repeat(jnp.arange(b, dtype=jnp.int32), T)              # [BT]
    pos_of = jnp.tile(jnp.arange(T, dtype=jnp.int32), b)                  # [BT]
    same_batch = batch_of[:, None] == batch_of[None, :]
    causal = pos_of[None, :] <= pos_of[:, None]
    key_ok = (combined_mask.reshape(b * T) > 0)[None, :]
    allowed = same_batch & causal & key_ok
    return jnp.where(allowed, 0.0, NEG_INF).astype(jnp.float32)


def forward(p, pixel_values, input_ids, attention_mask, labels=None):
    b = pixel_values.shape[0]

    # patch extraction (conv with kernel=stride=P expressed as a matmul inside the kernel)
    patches = pixel_values.reshape(b, C, IMG // P, P, IMG // P, P)
    patches = patches.transpose(0, 2, 4, 1, 3, 5).reshape(b * N_PATCH, PATCH_DIM)

    # token ids as a [B*L_TXT, 1] column (one-hot embedding gather happens in-kernel)
    ids_col = input_ids.reshape(b * L_TXT, 1).astype(jnp.int32)

    # combined attention mask (intended semantics of torch.ones((B, n_img)))
    image_attention_mask = jnp.ones((b, N_PATCH), dtype=attention_mask.dtype)
    combined_attention_mask = jnp.concatenate([image_attention_mask, attention_mask], axis=1)
    lm_mask = _build_lm_additive_mask(combined_attention_mask)            # [BT, BT]

    # single fused kernel: vision tower + projector + embed gather + new LayerNorm
    # + Gemma decoder layer + tied lm_head
    logits = pallas_paligemma_forward(p, patches.astype(jnp.float32), ids_col, lm_mask)
    logits = logits.reshape(b, T, VOCAB)

    loss = None
    if labels is not None:
        image_labels = jnp.full((b, N_PATCH), -100, dtype=labels.dtype)
        combined_labels = jnp.concatenate([image_labels, labels], axis=1)
        shift_logits = logits[:, :-1, :]
        shift_labels = combined_labels[:, 1:]
        valid = shift_labels != -100
        safe_labels = jnp.where(valid, shift_labels, 0)
        logp = jax.nn.log_softmax(shift_logits, axis=-1)
        nll = -jnp.take_along_axis(logp, safe_labels[..., None], axis=-1)[..., 0]
        loss = jnp.sum(nll * valid) / jnp.maximum(jnp.sum(valid), 1)
    return {"logits": logits, "loss": loss}


# ----------------------------- driver ------------------------------------------
if __name__ == "__main__":
    root = jax.random.PRNGKey(0)
    k_param, k_img, k_ids, k_lab = jax.random.split(root, 4)

    params = init_params(k_param)
    pixel_values = jax.random.normal(k_img, (B, C, IMG, IMG), dtype=jnp.float32)
    input_ids = jax.random.randint(k_ids, (B, L_TXT), 0, VOCAB, dtype=jnp.int32)
    attention_mask = jnp.ones((B, L_TXT), dtype=jnp.int32).at[1, -2:].set(0)
    labels = jax.random.randint(k_lab, (B, L_TXT), 0, VOCAB, dtype=jnp.int32)
    labels = jnp.where(attention_mask == 1, labels, -100)

    out = forward(params, pixel_values, input_ids, attention_mask, labels)
    logits = jax.block_until_ready(out["logits"])
    loss = jax.block_until_ready(out["loss"])

    assert logits.shape == (B, T, VOCAB)
    assert jnp.isfinite(logits).all() and jnp.isfinite(loss)
    print("KERNEL_OK")
</pallas_src>

<mosaic_0001>
module attributes {stable_mosaic.version = 11 : i64} {
  func.func @_fused_kernel(%arg0: i32, %arg1: memref<8x192xf32, #tpu.memory_space<vmem>>, %arg2: memref<16x1xi32, #tpu.memory_space<vmem>>, %arg3: memref<24x24xf32, #tpu.memory_space<vmem>>, %arg4: memref<192x32xbf16, #tpu.memory_space<vmem>>, %arg5: memref<4x32xf32, #tpu.memory_space<vmem>>, %arg6: memref<6x32xf32, #tpu.memory_space<vmem>>, %arg7: memref<32x96xbf16, #tpu.memory_space<vmem>>, %arg8: memref<1x96xf32, #tpu.memory_space<vmem>>, %arg9: memref<32x32xbf16, #tpu.memory_space<vmem>>, %arg10: memref<32x64xbf16, #tpu.memory_space<vmem>>, %arg11: memref<1x64xf32, #tpu.memory_space<vmem>>, %arg12: memref<64x32xbf16, #tpu.memory_space<vmem>>, %arg13: memref<3x32xf32, #tpu.memory_space<vmem>>, %arg14: memref<32x32xbf16, #tpu.memory_space<vmem>>, %arg15: memref<1x32xf32, #tpu.memory_space<vmem>>, %arg16: memref<128x32xbf16, #tpu.memory_space<vmem>>, %arg17: memref<5x32xf32, #tpu.memory_space<vmem>>, %arg18: memref<32x96xbf16, #tpu.memory_space<vmem>>, %arg19: memref<32x32xbf16, #tpu.memory_space<vmem>>, %arg20: memref<32x64xbf16, #tpu.memory_space<vmem>>, %arg21: memref<32x64xbf16, #tpu.memory_space<vmem>>, %arg22: memref<64x32xbf16, #tpu.memory_space<vmem>>, %arg23: memref<24x128xf32, #tpu.memory_space<vmem>>) attributes {dimension_semantics = [#tpu.dimension_semantics<arbitrary>], iteration_bounds = array<i64: 1>, scalar_prefetch = 0 : i64, scratch_operands = 0 : i64, tpu.core_type = #tpu.core_type<tc>, window_params = [{pipeline_mode = #tpu.pipeline_mode<synchronous>, transform_indices = @transform_0, window_bounds = array<i64: 8, 192>}, {pipeline_mode = #tpu.pipeline_mode<synchronous>, transform_indices = @transform_1, window_bounds = array<i64: 16, 1>}, {pipeline_mode = #tpu.pipeline_mode<synchronous>, transform_indices = @transform_2, window_bounds = array<i64: 24, 24>}, {pipeline_mode = #tpu.pipeline_mode<synchronous>, transform_indices = @transform_3, window_bounds = array<i64: 192, 32>}, {pipeline_mode = #tpu.pipeline_mode<synchronous>, transform_indices = @transform_4, window_bounds = array<i64: 4, 32>}, {pipeline_mode = #tpu.pipeline_mode<synchronous>, transform_indices = @transform_5, window_bounds = array<i64: 6, 32>}, {pipeline_mode = #tpu.pipeline_mode<synchronous>, transform_indices = @transform_6, window_bounds = array<i64: 32, 96>}, {pipeline_mode = #tpu.pipeline_mode<synchronous>, transform_indices = @transform_7, window_bounds = array<i64: 1, 96>}, {pipeline_mode = #tpu.pipeline_mode<synchronous>, transform_indices = @transform_8, window_bounds = array<i64: 32, 32>}, {pipeline_mode = #tpu.pipeline_mode<synchronous>, transform_indices = @transform_9, window_bounds = array<i64: 32, 64>}, {pipeline_mode = #tpu.pipeline_mode<synchronous>, transform_indices = @transform_10, window_bounds = array<i64: 1, 64>}, {pipeline_mode = #tpu.pipeline_mode<synchronous>, transform_indices = @transform_11, window_bounds = array<i64: 64, 32>}, {pipeline_mode = #tpu.pipeline_mode<synchronous>, transform_indices = @transform_12, window_bounds = array<i64: 3, 32>}, {pipeline_mode = #tpu.pipeline_mode<synchronous>, transform_indices = @transform_13, window_bounds = array<i64: 32, 32>}, {pipeline_mode = #tpu.pipeline_mode<synchronous>, transform_indices = @transform_14, window_bounds = array<i64: 1, 32>}, {pipeline_mode = #tpu.pipeline_mode<synchronous>, transform_indices = @transform_15, window_bounds = array<i64: 128, 32>}, {pipeline_mode = #tpu.pipeline_mode<synchronous>, transform_indices = @transform_16, window_bounds = array<i64: 5, 32>}, {pipeline_mode = #tpu.pipeline_mode<synchronous>, transform_indices = @transform_17, window_bounds = array<i64: 32, 96>}, {pipeline_mode = #tpu.pipeline_mode<synchronous>, transform_indices = @transform_18, window_bounds = array<i64: 32, 32>}, {pipeline_mode = #tpu.pipeline_mode<synchronous>, transform_indices = @transform_19, window_bounds = array<i64: 32, 64>}, {pipeline_mode = #tpu.pipeline_mode<synchronous>, transform_indices = @transform_20, window_bounds = array<i64: 32, 64>}, {pipeline_mode = #tpu.pipeline_mode<synchronous>, transform_indices = @transform_21, window_bounds = array<i64: 64, 32>}, {pipeline_mode = #tpu.pipeline_mode<synchronous>, transform_indices = @transform_22, window_bounds = array<i64: 24, 128>}]} {
    %c0 = arith.constant 0 : index
    %c0_0 = arith.constant 0 : index
    %0 = vector.load %arg1[%c0, %c0_0] : memref<8x192xf32, #tpu.memory_space<vmem>>, vector<8x192xf32>
    %c0_1 = arith.constant 0 : index
    %c0_2 = arith.constant 0 : index
    %1 = vector.load %arg4[%c0_1, %c0_2] : memref<192x32xbf16, #tpu.memory_space<vmem>>, vector<192x32xbf16>
    %2 = arith.truncf %0 : vector<8x192xf32> to vector<8x192xbf16>
    %cst = arith.constant dense<0.000000e+00> : vector<8x32xf32>
    %3 = tpu.matmul %2, %1, %cst {dimension_numbers = #tpu.dot_dimension_numbers<[1], [0], [0], [1], [0, 0, 1, 1], [], []>} : vector<8x192xbf16>, vector<192x32xbf16>, vector<8x32xf32> -> vector<8x32xf32>
    %c0_3 = arith.constant 0 : index
    %c0_4 = arith.constant 0 : index
    %4 = vector.load %arg13[%c0_3, %c0_4] : memref<3x32xf32, #tpu.memory_space<vmem>>, vector<1x32xf32>
    %5 = vector.broadcast %4 : vector<1x32xf32> to vector<8x32xf32>
    %6 = arith.addf %3, %5 : vector<8x32xf32>
    %c0_5 = arith.constant 0 : index
    %c0_6 = arith.constant 0 : index
    %7 = vector.load %arg5[%c0_5, %c0_6] : memref<4x32xf32, #tpu.memory_space<vmem>>, vector<4x32xf32>
    %8 = tpu.concatenate %7, %7 in 0 : vector<4x32xf32>, vector<4x32xf32> -> vector<8x32xf32>
    %9 = arith.addf %6, %8 : vector<8x32xf32>
    %10 = tpu.iota {dimensions = array<i32: 0>} : vector<8x8xi32>
    %11 = tpu.iota {dimensions = array<i32: 1>} : vector<8x8xi32>
    %c2_i32 = arith.constant 2 : i32
    %12 = vector.broadcast %c2_i32 : i32 to vector<8x8xi32>
    %13 = arith.shrsi %10, %12 : vector<8x8xi32>
    %c2_i32_7 = arith.constant 2 : i32
    %14 = vector.broadcast %c2_i32_7 : i32 to vector<8x8xi32>
    %15 = arith.shrsi %11, %14 : vector<8x8xi32>
    %16 = arith.cmpi eq, %13, %15 : vector<8x8xi32>
    %cst_8 = arith.constant 0.000000e+00 : f32
    %cst_9 = arith.constant -1.000000e+09 : f32
    %17 = vector.broadcast %cst_8 : f32 to vector<8x8xf32>
    %18 = vector.broadcast %cst_9 : f32 to vector<8x8xf32>
    %19 = arith.select %16, %17, %18 : vector<8x8xi1>, vector<8x8xf32>
    %c0_10 = arith.constant 0 : index
    %c0_11 = arith.constant 0 : index
    %20 = vector.load %arg6[%c0_10, %c0_11] : memref<6x32xf32, #tpu.memory_space<vmem>>, vector<1x32xf32>
    %c1 = arith.constant 1 : index
    %c0_12 = arith.constant 0 : index
    %21 = vector.load %arg6[%c1, %c0_12] : memref<6x32xf32, #tpu.memory_space<vmem>>, vector<1x32xf32>
    %cst_13 = arith.constant dense<0.000000e+00> : vector<8xf32>
    %22 = vector.multi_reduction <add>, %9, %cst_13 [1] : vector<8x32xf32> to vector<8xf32>
    %23 = vector.shape_cast %22 : vector<8xf32> to vector<8x1xf32>
    %cst_14 = arith.constant 3.200000e+01 : f32
    %24 = vector.broadcast %cst_14 : f32 to vector<8x1xf32>
    %25 = arith.divf %23, %24 : vector<8x1xf32>
    %26 = vector.broadcast %25 : vector<8x1xf32> to vector<8x32xf32>
    %27 = arith.subf %9, %26 : vector<8x32xf32>
    %28 = arith.mulf %27, %27 : vector<8x32xf32>
    %cst_15 = arith.constant dense<0.000000e+00> : vector<8xf32>
    %29 = vector.multi_reduction <add>, %28, %cst_15 [1] : vector<8x32xf32> to vector<8xf32>
    %30 = vector.shape_cast %29 : vector<8xf32> to vector<8x1xf32>
    %cst_16 = arith.constant 3.200000e+01 : f32
    %31 = vector.broadcast %cst_16 : f32 to vector<8x1xf32>
    %32 = arith.divf %30, %31 : vector<8x1xf32>
    %33 = vector.broadcast %25 : vector<8x1xf32> to vector<8x32xf32>
    %34 = arith.subf %9, %33 : vector<8x32xf32>
    %cst_17 = arith.constant 9.99999997E-7 : f32
    %35 = vector.broadcast %cst_17 : f32 to vector<8x1xf32>
    %36 = arith.addf %32, %35 : vector<8x1xf32>
    %37 = math.rsqrt %36 : vector<8x1xf32>
    %38 = vector.broadcast %37 : vector<8x1xf32> to vector<8x32xf32>
    %39 = arith.mulf %34, %38 : vector<8x32xf32>
    %40 = vector.broadcast %20 : vector<1x32xf32> to vector<8x32xf32>
    %41 = arith.mulf %39, %40 : vector<8x32xf32>
    %42 = vector.broadcast %21 : vector<1x32xf32> to vector<8x32xf32>
    %43 = arith.addf %41, %42 : vector<8x32xf32>
    %c0_18 = arith.constant 0 : index
    %c0_19 = arith.constant 0 : index
    %44 = vector.load %arg7[%c0_18, %c0_19] : memref<32x96xbf16, #tpu.memory_space<vmem>>, vector<32x96xbf16>
    %45 = arith.truncf %43 : vector<8x32xf32> to vector<8x32xbf16>
    %cst_20 = arith.constant dense<0.000000e+00> : vector<8x96xf32>
    %46 = tpu.matmul %45, %44, %cst_20 {dimension_numbers = #tpu.dot_dimension_numbers<[1], [0], [0], [1], [0, 0, 1, 1], [], []>} : vector<8x32xbf16>, vector<32x96xbf16>, vector<8x96xf32> -> vector<8x96xf32>
    %c0_21 = arith.constant 0 : index
    %c0_22 = arith.constant 0 : index
    %47 = vector.load %arg8[%c0_21, %c0_22] : memref<1x96xf32, #tpu.memory_space<vmem>>, vector<1x96xf32>
    %48 = vector.broadcast %47 : vector<1x96xf32> to vector<8x96xf32>
    %49 = arith.addf %46, %48 : vector<8x96xf32>
    %50 = vector.extract_strided_slice %49 {offsets = [0, 0], sizes = [8, 32], strides = [1, 1]} : vector<8x96xf32> to vector<8x32xf32>
    %51 = vector.extract_strided_slice %49 {offsets = [0, 32], sizes = [8, 32], strides = [1, 1]} : vector<8x96xf32> to vector<8x32xf32>
    %52 = vector.extract_strided_slice %49 {offsets = [0, 64], sizes = [8, 32], strides = [1, 1]} : vector<8x96xf32> to vector<8x32xf32>
    %c0_23 = arith.constant 0 : index
    %c0_24 = arith.constant 0 : index
    %53 = vector.load %arg9[%c0_23, %c0_24] : memref<32x32xbf16, #tpu.memory_space<vmem>>, vector<32x32xbf16>
    %54 = vector.extract_strided_slice %50 {offsets = [0, 0], sizes = [8, 8], strides = [1, 1]} : vector<8x32xf32> to vector<8x8xf32>
    %55 = vector.extract_strided_slice %51 {offsets = [0, 0], sizes = [8, 8], strides = [1, 1]} : vector<8x32xf32> to vector<8x8xf32>
    %56 = arith.truncf %54 : vector<8x8xf32> to vector<8x8xbf16>
    %57 = arith.truncf %55 : vector<8x8xf32> to vector<8x8xbf16>
    %cst_25 = arith.constant dense<0.000000e+00> : vector<8x8xf32>
    %58 = tpu.matmul %56, %57, %cst_25 {dimension_numbers = #tpu.dot_dimension_numbers<[1], [1], [0], [0], [0, 0, 1, 0], [], []>} : vector<8x8xbf16>, vector<8x8xbf16>, vector<8x8xf32> -> vector<8x8xf32>
    %cst_26 = arith.constant 0.353553385 : f32
    %59 = vector.broadcast %cst_26 : f32 to vector<8x8xf32>
    %60 = arith.mulf %58, %59 : vector<8x8xf32>
    %61 = arith.addf %60, %19 : vector<8x8xf32>
    %cst_27 = arith.constant dense<0xFF800000> : vector<8xf32>
    %62 = vector.multi_reduction <maximumf>, %61, %cst_27 [1] : vector<8x8xf32> to vector<8xf32>
    %63 = vector.shape_cast %62 : vector<8xf32> to vector<8x1xf32>
    %64 = vector.broadcast %63 : vector<8x1xf32> to vector<8x8xf32>
    %65 = arith.subf %61, %64 : vector<8x8xf32>
    %66 = math.exp %65 : vector<8x8xf32>
    %cst_28 = arith.constant dense<0.000000e+00> : vector<8xf32>
    %67 = vector.multi_reduction <add>, %66, %cst_28 [1] : vector<8x8xf32> to vector<8xf32>
    %68 = vector.shape_cast %67 : vector<8xf32> to vector<8x1xf32>
    %69 = tpu.reciprocal %68 {approx = true} : vector<8x1xf32> -> vector<8x1xf32>
    %70 = vector.broadcast %69 : vector<8x1xf32> to vector<8x8xf32>
    %71 = arith.mulf %66, %70 : vector<8x8xf32>
    %72 = vector.extract_strided_slice %52 {offsets = [0, 0], sizes = [8, 8], strides = [1, 1]} : vector<8x32xf32> to vector<8x8xf32>
    %73 = arith.truncf %71 : vector<8x8xf32> to vector<8x8xbf16>
    %74 = arith.truncf %72 : vector<8x8xf32> to vector<8x8xbf16>
    %cst_29 = arith.constant dense<0.000000e+00> : vector<8x8xf32>
    %75 = tpu.matmul %73, %74, %cst_29 {dimension_numbers = #tpu.dot_dimension_numbers<[1], [0], [0], [1], [0, 0, 1, 1], [], []>} : vector<8x8xbf16>, vector<8x8xbf16>, vector<8x8xf32> -> vector<8x8xf32>
    %76 = vector.extract_strided_slice %50 {offsets = [0, 8], sizes = [8, 8], strides = [1, 1]} : vector<8x32xf32> to vector<8x8xf32>
    %77 = vector.extract_strided_slice %51 {offsets = [0, 8], sizes = [8, 8], strides = [1, 1]} : vector<8x32xf32> to vector<8x8xf32>
    %78 = arith.truncf %76 : vector<8x8xf32> to vector<8x8xbf16>
    %79 = arith.truncf %77 : vector<8x8xf32> to vector<8x8xbf16>
    %cst_30 = arith.constant dense<0.000000e+00> : vector<8x8xf32>
    %80 = tpu.matmul %78, %79, %cst_30 {dimension_numbers = #tpu.dot_dimension_numbers<[1], [1], [0], [0], [0, 0, 1, 0], [], []>} : vector<8x8xbf16>, vector<8x8xbf16>, vector<8x8xf32> -> vector<8x8xf32>
    %cst_31 = arith.constant 0.353553385 : f32
    %81 = vector.broadcast %cst_31 : f32 to vector<8x8xf32>
    %82 = arith.mulf %80, %81 : vector<8x8xf32>
    %83 = arith.addf %82, %19 : vector<8x8xf32>
    %cst_32 = arith.constant dense<0xFF800000> : vector<8xf32>
    %84 = vector.multi_reduction <maximumf>, %83, %cst_32 [1] : vector<8x8xf32> to vector<8xf32>
    %85 = vector.shape_cast %84 : vector<8xf32> to vector<8x1xf32>
    %86 = vector.broadcast %85 : vector<8x1xf32> to vector<8x8xf32>
    %87 = arith.subf %83, %86 : vector<8x8xf32>
    %88 = math.exp %87 : vector<8x8xf32>
    %cst_33 = arith.constant dense<0.000000e+00> : vector<8xf32>
    %89 = vector.multi_reduction <add>, %88, %cst_33 [1] : vector<8x8xf32> to vector<8xf32>
    %90 = vector.shape_cast %89 : vector<8xf32> to vector<8x1xf32>
    %91 = tpu.reciprocal %90 {approx = true} : vector<8x1xf32> -> vector<8x1xf32>
    %92 = vector.broadcast %91 : vector<8x1xf32> to vector<8x8xf32>
    %93 = arith.mulf %88, %92 : vector<8x8xf32>
    %94 = vector.extract_strided_slice %52 {offsets = [0, 8], sizes = [8, 8], strides = [1, 1]} : vector<8x32xf32> to vector<8x8xf32>
    %95 = arith.truncf %93 : vector<8x8xf32> to vector<8x8xbf16>
    %96 = arith.truncf %94 : vector<8x8xf32> to vector<8x8xbf16>
    %cst_34 = arith.constant dense<0.000000e+00> : vector<8x8xf32>
    %97 = tpu.matmul %95, %96, %cst_34 {dimension_numbers = #tpu.dot_dimension_numbers<[1], [0], [0], [1], [0, 0, 1, 1], [], []>} : vector<8x8xbf16>, vector<8x8xbf16>, vector<8x8xf32> -> vector<8x8xf32>
    %98 = vector.extract_strided_slice %50 {offsets = [0, 16], sizes = [8, 8], strides = [1, 1]} : vector<8x32xf32> to vector<8x8xf32>
    %99 = vector.extract_strided_slice %51 {offsets = [0, 16], sizes = [8, 8], strides = [1, 1]} : vector<8x32xf32> to vector<8x8xf32>
    %100 = arith.truncf %98 : vector<8x8xf32> to vector<8x8xbf16>
    %101 = arith.truncf %99 : vector<8x8xf32> to vector<8x8xbf16>
    %cst_35 = arith.constant dense<0.000000e+00> : vector<8x8xf32>
    %102 = tpu.matmul %100, %101, %cst_35 {dimension_numbers = #tpu.dot_dimension_numbers<[1], [1], [0], [0], [0, 0, 1, 0], [], []>} : vector<8x8xbf16>, vector<8x8xbf16>, vector<8x8xf32> -> vector<8x8xf32>
    %cst_36 = arith.constant 0.353553385 : f32
    %103 = vector.broadcast %cst_36 : f32 to vector<8x8xf32>
    %104 = arith.mulf %102, %103 : vector<8x8xf32>
    %105 = arith.addf %104, %19 : vector<8x8xf32>
    %cst_37 = arith.constant dense<0xFF800000> : vector<8xf32>
    %106 = vector.multi_reduction <maximumf>, %105, %cst_37 [1] : vector<8x8xf32> to vector<8xf32>
    %107 = vector.shape_cast %106 : vector<8xf32> to vector<8x1xf32>
    %108 = vector.broadcast %107 : vector<8x1xf32> to vector<8x8xf32>
    %109 = arith.subf %105, %108 : vector<8x8xf32>
    %110 = math.exp %109 : vector<8x8xf32>
    %cst_38 = arith.constant dense<0.000000e+00> : vector<8xf32>
    %111 = vector.multi_reduction <add>, %110, %cst_38 [1] : vector<8x8xf32> to vector<8xf32>
    %112 = vector.shape_cast %111 : vector<8xf32> to vector<8x1xf32>
    %113 = tpu.reciprocal %112 {approx = true} : vector<8x1xf32> -> vector<8x1xf32>
    %114 = vector.broadcast %113 : vector<8x1xf32> to vector<8x8xf32>
    %115 = arith.mulf %110, %114 : vector<8x8xf32>
    %116 = vector.extract_strided_slice %52 {offsets = [0, 16], sizes = [8, 8], strides = [1, 1]} : vector<8x32xf32> to vector<8x8xf32>
    %117 = arith.truncf %115 : vector<8x8xf32> to vector<8x8xbf16>
    %118 = arith.truncf %116 : vector<8x8xf32> to vector<8x8xbf16>
    %cst_39 = arith.constant dense<0.000000e+00> : vector<8x8xf32>
    %119 = tpu.matmul %117, %118, %cst_39 {dimension_numbers = #tpu.dot_dimension_numbers<[1], [0], [0], [1], [0, 0, 1, 1], [], []>} : vector<8x8xbf16>, vector<8x8xbf16>, vector<8x8xf32> -> vector<8x8xf32>
    %120 = vector.extract_strided_slice %50 {offsets = [0, 24], sizes = [8, 8], strides = [1, 1]} : vector<8x32xf32> to vector<8x8xf32>
    %121 = vector.extract_strided_slice %51 {offsets = [0, 24], sizes = [8, 8], strides = [1, 1]} : vector<8x32xf32> to vector<8x8xf32>
    %122 = arith.truncf %120 : vector<8x8xf32> to vector<8x8xbf16>
    %123 = arith.truncf %121 : vector<8x8xf32> to vector<8x8xbf16>
    %cst_40 = arith.constant dense<0.000000e+00> : vector<8x8xf32>
    %124 = tpu.matmul %122, %123, %cst_40 {dimension_numbers = #tpu.dot_dimension_numbers<[1], [1], [0], [0], [0, 0, 1, 0], [], []>} : vector<8x8xbf16>, vector<8x8xbf16>, vector<8x8xf32> -> vector<8x8xf32>
    %cst_41 = arith.constant 0.353553385 : f32
    %125 = vector.broadcast %cst_41 : f32 to vector<8x8xf32>
    %126 = arith.mulf %124, %125 : vector<8x8xf32>
    %127 = arith.addf %126, %19 : vector<8x8xf32>
    %cst_42 = arith.constant dense<0xFF800000> : vector<8xf32>
    %128 = vector.multi_reduction <maximumf>, %127, %cst_42 [1] : vector<8x8xf32> to vector<8xf32>
    %129 = vector.shape_cast %128 : vector<8xf32> to vector<8x1xf32>
    %130 = vector.broadcast %129 : vector<8x1xf32> to vector<8x8xf32>
    %131 = arith.subf %127, %130 : vector<8x8xf32>
    %132 = math.exp %131 : vector<8x8xf32>
    %cst_43 = arith.constant dense<0.000000e+00> : vector<8xf32>
    %133 = vector.multi_reduction <add>, %132, %cst_43 [1] : vector<8x8xf32> to vector<8xf32>
    %134 = vector.shape_cast %133 : vector<8xf32> to vector<8x1xf32>
    %135 = tpu.reciprocal %134 {approx = true} : vector<8x1xf32> -> vector<8x1xf32>
    %136 = vector.broadcast %135 : vector<8x1xf32> to vector<8x8xf32>
    %137 = arith.mulf %132, %136 : vector<8x8xf32>
    %138 = vector.extract_strided_slice %52 {offsets = [0, 24], sizes = [8, 8], strides = [1, 1]} : vector<8x32xf32> to vector<8x8xf32>
    %139 = arith.truncf %137 : vector<8x8xf32> to vector<8x8xbf16>
    %140 = arith.truncf %138 : vector<8x8xf32> to vector<8x8xbf16>
    %cst_44 = arith.constant dense<0.000000e+00> : vector<8x8xf32>
    %141 = tpu.matmul %139, %140, %cst_44 {dimension_numbers = #tpu.dot_dimension_numbers<[1], [0], [0], [1], [0, 0, 1, 1], [], []>} : vector<8x8xbf16>, vector<8x8xbf16>, vector<8x8xf32> -> vector<8x8xf32>
    %142 = tpu.concatenate %75, %97, %119, %141 in 1 : vector<8x8xf32>, vector<8x8xf32>, vector<8x8xf32>, vector<8x8xf32> -> vector<8x32xf32>
    %143 = arith.truncf %142 : vector<8x32xf32> to vector<8x32xbf16>
    %cst_45 = arith.constant dense<0.000000e+00> : vector<8x32xf32>
    %144 = tpu.matmul %143, %53, %cst_45 {dimension_numbers = #tpu.dot_dimension_numbers<[1], [0], [0], [1], [0, 0, 1, 1], [], []>} : vector<8x32xbf16>, vector<32x32xbf16>, vector<8x32xf32> -> vector<8x32xf32>
    %145 = arith.addf %9, %144 : vector<8x32xf32>
    %c1_46 = arith.constant 1 : index
    %c0_47 = arith.constant 0 : index
    %146 = vector.load %arg13[%c1_46, %c0_47] : memref<3x32xf32, #tpu.memory_space<vmem>>, vector<1x32xf32>
    %147 = vector.broadcast %146 : vector<1x32xf32> to vector<8x32xf32>
    %148 = arith.addf %145, %147 : vector<8x32xf32>
    %c2 = arith.constant 2 : index
    %c0_48 = arith.constant 0 : index
    %149 = vector.load %arg6[%c2, %c0_48] : memref<6x32xf32, #tpu.memory_space<vmem>>, vector<1x32xf32>
    %c3 = arith.constant 3 : index
    %c0_49 = arith.constant 0 : index
    %150 = vector.load %arg6[%c3, %c0_49] : memref<6x32xf32, #tpu.memory_space<vmem>>, vector<1x32xf32>
    %cst_50 = arith.constant dense<0.000000e+00> : vector<8xf32>
    %151 = vector.multi_reduction <add>, %148, %cst_50 [1] : vector<8x32xf32> to vector<8xf32>
    %152 = vector.shape_cast %151 : vector<8xf32> to vector<8x1xf32>
    %cst_51 = arith.constant 3.200000e+01 : f32
    %153 = vector.broadcast %cst_51 : f32 to vector<8x1xf32>
    %154 = arith.divf %152, %153 : vector<8x1xf32>
    %155 = vector.broadcast %154 : vector<8x1xf32> to vector<8x32xf32>
    %156 = arith.subf %148, %155 : vector<8x32xf32>
    %157 = arith.mulf %156, %156 : vector<8x32xf32>
    %cst_52 = arith.constant dense<0.000000e+00> : vector<8xf32>
    %158 = vector.multi_reduction <add>, %157, %cst_52 [1] : vector<8x32xf32> to vector<8xf32>
    %159 = vector.shape_cast %158 : vector<8xf32> to vector<8x1xf32>
    %cst_53 = arith.constant 3.200000e+01 : f32
    %160 = vector.broadcast %cst_53 : f32 to vector<8x1xf32>
    %161 = arith.divf %159, %160 : vector<8x1xf32>
    %162 = vector.broadcast %154 : vector<8x1xf32> to vector<8x32xf32>
    %163 = arith.subf %148, %162 : vector<8x32xf32>
    %cst_54 = arith.constant 9.99999997E-7 : f32
    %164 = vector.broadcast %cst_54 : f32 to vector<8x1xf32>
    %165 = arith.addf %161, %164 : vector<8x1xf32>
    %166 = math.rsqrt %165 : vector<8x1xf32>
    %167 = vector.broadcast %166 : vector<8x1xf32> to vector<8x32xf32>
    %168 = arith.mulf %163, %167 : vector<8x32xf32>
    %169 = vector.broadcast %149 : vector<1x32xf32> to vector<8x32xf32>
    %170 = arith.mulf %168, %169 : vector<8x32xf32>
    %171 = vector.broadcast %150 : vector<1x32xf32> to vector<8x32xf32>
    %172 = arith.addf %170, %171 : vector<8x32xf32>
    %c0_55 = arith.constant 0 : index
    %c0_56 = arith.constant 0 : index
    %173 = vector.load %arg10[%c0_55, %c0_56] : memref<32x64xbf16, #tpu.memory_space<vmem>>, vector<32x64xbf16>
    %174 = arith.truncf %172 : vector<8x32xf32> to vector<8x32xbf16>
    %cst_57 = arith.constant dense<0.000000e+00> : vector<8x64xf32>
    %175 = tpu.matmul %174, %173, %cst_57 {dimension_numbers = #tpu.dot_dimension_numbers<[1], [0], [0], [1], [0, 0, 1, 1], [], []>} : vector<8x32xbf16>, vector<32x64xbf16>, vector<8x64xf32> -> vector<8x64xf32>
    %c0_58 = arith.constant 0 : index
    %c0_59 = arith.constant 0 : index
    %176 = vector.load %arg11[%c0_58, %c0_59] : memref<1x64xf32, #tpu.memory_space<vmem>>, vector<1x64xf32>
    %177 = vector.broadcast %176 : vector<1x64xf32> to vector<8x64xf32>
    %178 = arith.addf %175, %177 : vector<8x64xf32>
    %179 = arith.mulf %178, %178 : vector<8x64xf32>
    %180 = arith.mulf %178, %179 : vector<8x64xf32>
    %cst_60 = arith.constant 4.471500e-02 : f32
    %181 = vector.broadcast %cst_60 : f32 to vector<8x64xf32>
    %182 = arith.mulf %181, %180 : vector<8x64xf32>
    %183 = arith.addf %178, %182 : vector<8x64xf32>
    %cst_61 = arith.constant 0.797884583 : f32
    %184 = vector.broadcast %cst_61 : f32 to vector<8x64xf32>
    %185 = arith.mulf %184, %183 : vector<8x64xf32>
    %186 = math.tanh %185 : vector<8x64xf32>
    %cst_62 = arith.constant 1.000000e+00 : f32
    %187 = vector.broadcast %cst_62 : f32 to vector<8x64xf32>
    %188 = arith.addf %187, %186 : vector<8x64xf32>
    %cst_63 = arith.constant 5.000000e-01 : f32
    %189 = vector.broadcast %cst_63 : f32 to vector<8x64xf32>
    %190 = arith.mulf %189, %188 : vector<8x64xf32>
    %191 = arith.mulf %178, %190 : vector<8x64xf32>
    %c0_64 = arith.constant 0 : index
    %c0_65 = arith.constant 0 : index
    %192 = vector.load %arg12[%c0_64, %c0_65] : memref<64x32xbf16, #tpu.memory_space<vmem>>, vector<64x32xbf16>
    %193 = arith.truncf %191 : vector<8x64xf32> to vector<8x64xbf16>
    %cst_66 = arith.constant dense<0.000000e+00> : vector<8x32xf32>
    %194 = tpu.matmul %193, %192, %cst_66 {dimension_numbers = #tpu.dot_dimension_numbers<[1], [0], [0], [1], [0, 0, 1, 1], [], []>} : vector<8x64xbf16>, vector<64x32xbf16>, vector<8x32xf32> -> vector<8x32xf32>
    %195 = arith.addf %148, %194 : vector<8x32xf32>
    %c2_67 = arith.constant 2 : index
    %c0_68 = arith.constant 0 : index
    %196 = vector.load %arg13[%c2_67, %c0_68] : memref<3x32xf32, #tpu.memory_space<vmem>>, vector<1x32xf32>
    %197 = vector.broadcast %196 : vector<1x32xf32> to vector<8x32xf32>
    %198 = arith.addf %195, %197 : vector<8x32xf32>
    %c4 = arith.constant 4 : index
    %c0_69 = arith.constant 0 : index
    %199 = vector.load %arg6[%c4, %c0_69] : memref<6x32xf32, #tpu.memory_space<vmem>>, vector<1x32xf32>
    %c5 = arith.constant 5 : index
    %c0_70 = arith.constant 0 : index
    %200 = vector.load %arg6[%c5, %c0_70] : memref<6x32xf32, #tpu.memory_space<vmem>>, vector<1x32xf32>
    %cst_71 = arith.constant dense<0.000000e+00> : vector<8xf32>
    %201 = vector.multi_reduction <add>, %198, %cst_71 [1] : vector<8x32xf32> to vector<8xf32>
    %202 = vector.shape_cast %201 : vector<8xf32> to vector<8x1xf32>
    %cst_72 = arith.constant 3.200000e+01 : f32
    %203 = vector.broadcast %cst_72 : f32 to vector<8x1xf32>
    %204 = arith.divf %202, %203 : vector<8x1xf32>
    %205 = vector.broadcast %204 : vector<8x1xf32> to vector<8x32xf32>
    %206 = arith.subf %198, %205 : vector<8x32xf32>
    %207 = arith.mulf %206, %206 : vector<8x32xf32>
    %cst_73 = arith.constant dense<0.000000e+00> : vector<8xf32>
    %208 = vector.multi_reduction <add>, %207, %cst_73 [1] : vector<8x32xf32> to vector<8xf32>
    %209 = vector.shape_cast %208 : vector<8xf32> to vector<8x1xf32>
    %cst_74 = arith.constant 3.200000e+01 : f32
    %210 = vector.broadcast %cst_74 : f32 to vector<8x1xf32>
    %211 = arith.divf %209, %210 : vector<8x1xf32>
    %212 = vector.broadcast %204 : vector<8x1xf32> to vector<8x32xf32>
    %213 = arith.subf %198, %212 : vector<8x32xf32>
    %cst_75 = arith.constant 9.99999997E-7 : f32
    %214 = vector.broadcast %cst_75 : f32 to vector<8x1xf32>
    %215 = arith.addf %211, %214 : vector<8x1xf32>
    %216 = math.rsqrt %215 : vector<8x1xf32>
    %217 = vector.broadcast %216 : vector<8x1xf32> to vector<8x32xf32>
    %218 = arith.mulf %213, %217 : vector<8x32xf32>
    %219 = vector.broadcast %199 : vector<1x32xf32> to vector<8x32xf32>
    %220 = arith.mulf %218, %219 : vector<8x32xf32>
    %221 = vector.broadcast %200 : vector<1x32xf32> to vector<8x32xf32>
    %222 = arith.addf %220, %221 : vector<8x32xf32>
    %c0_76 = arith.constant 0 : index
    %c0_77 = arith.constant 0 : index
    %223 = vector.load %arg14[%c0_76, %c0_77] : memref<32x32xbf16, #tpu.memory_space<vmem>>, vector<32x32xbf16>
    %224 = arith.truncf %222 : vector<8x32xf32> to vector<8x32xbf16>
    %cst_78 = arith.constant dense<0.000000e+00> : vector<8x32xf32>
    %225 = tpu.matmul %224, %223, %cst_78 {dimension_numbers = #tpu.dot_dimension_numbers<[1], [0], [0], [1], [0, 0, 1, 1], [], []>} : vector<8x32xbf16>, vector<32x32xbf16>, vector<8x32xf32> -> vector<8x32xf32>
    %c0_79 = arith.constant 0 : index
    %c0_80 = arith.constant 0 : index
    %226 = vector.load %arg15[%c0_79, %c0_80] : memref<1x32xf32, #tpu.memory_space<vmem>>, vector<1x32xf32>
    %227 = vector.broadcast %226 : vector<1x32xf32> to vector<8x32xf32>
    %228 = arith.addf %225, %227 : vector<8x32xf32>
    %c0_81 = arith.constant 0 : index
    %c0_82 = arith.constant 0 : index
    %229 = vector.load %arg2[%c0_81, %c0_82] : memref<16x1xi32, #tpu.memory_space<vmem>>, vector<16x1xi32>
    %230 = tpu.iota {dimensions = array<i32: 1>} : vector<16x128xi32>
    %231 = vector.broadcast %229 : vector<16x1xi32> to vector<16x128xi32>
    %232 = arith.cmpi eq, %230, %231 : vector<16x128xi32>
    %233 = arith.extui %232 : vector<16x128xi1> to vector<16x128xi32>
    %234 = arith.sitofp %233 : vector<16x128xi32> to vector<16x128xf32>
    %235 = arith.truncf %234 : vector<16x128xf32> to vector<16x128xbf16>
    %c0_83 = arith.constant 0 : index
    %c0_84 = arith.constant 0 : index
    %236 = vector.load %arg16[%c0_83, %c0_84] : memref<128x32xbf16, #tpu.memory_space<vmem>>, vector<128x32xbf16>
    %cst_85 = arith.constant dense<0.000000e+00> : vector<16x32xf32>
    %237 = tpu.matmul %235, %236, %cst_85 {dimension_numbers = #tpu.dot_dimension_numbers<[1], [0], [0], [1], [0, 0, 1, 1], [], []>} : vector<16x128xbf16>, vector<128x32xbf16>, vector<16x32xf32> -> vector<16x32xf32>
    %238 = vector.extract_strided_slice %228 {offsets = [0, 0], sizes = [4, 32], strides = [1, 1]} : vector<8x32xf32> to vector<4x32xf32>
    %239 = vector.extract_strided_slice %237 {offsets = [0, 0], sizes = [8, 32], strides = [1, 1]} : vector<16x32xf32> to vector<8x32xf32>
    %240 = vector.extract_strided_slice %228 {offsets = [4, 0], sizes = [4, 32], strides = [1, 1]} : vector<8x32xf32> to vector<4x32xf32>
    %241 = vector.extract_strided_slice %237 {offsets = [8, 0], sizes = [8, 32], strides = [1, 1]} : vector<16x32xf32> to vector<8x32xf32>
    %242 = tpu.concatenate %238, %239, %240, %241 in 0 : vector<4x32xf32>, vector<8x32xf32>, vector<4x32xf32>, vector<8x32xf32> -> vector<24x32xf32>
    %c0_86 = arith.constant 0 : index
    %c0_87 = arith.constant 0 : index
    %243 = vector.load %arg17[%c0_86, %c0_87] : memref<5x32xf32, #tpu.memory_space<vmem>>, vector<1x32xf32>
    %c1_88 = arith.constant 1 : index
    %c0_89 = arith.constant 0 : index
    %244 = vector.load %arg17[%c1_88, %c0_89] : memref<5x32xf32, #tpu.memory_space<vmem>>, vector<1x32xf32>
    %cst_90 = arith.constant dense<0.000000e+00> : vector<24xf32>
    %245 = vector.multi_reduction <add>, %242, %cst_90 [1] : vector<24x32xf32> to vector<24xf32>
    %246 = vector.shape_cast %245 : vector<24xf32> to vector<24x1xf32>
    %cst_91 = arith.constant 3.200000e+01 : f32
    %247 = vector.broadcast %cst_91 : f32 to vector<24x1xf32>
    %248 = arith.divf %246, %247 : vector<24x1xf32>
    %249 = vector.broadcast %248 : vector<24x1xf32> to vector<24x32xf32>
    %250 = arith.subf %242, %249 : vector<24x32xf32>
    %251 = arith.mulf %250, %250 : vector<24x32xf32>
    %cst_92 = arith.constant dense<0.000000e+00> : vector<24xf32>
    %252 = vector.multi_reduction <add>, %251, %cst_92 [1] : vector<24x32xf32> to vector<24xf32>
    %253 = vector.shape_cast %252 : vector<24xf32> to vector<24x1xf32>
    %cst_93 = arith.constant 3.200000e+01 : f32
    %254 = vector.broadcast %cst_93 : f32 to vector<24x1xf32>
    %255 = arith.divf %253, %254 : vector<24x1xf32>
    %256 = vector.broadcast %248 : vector<24x1xf32> to vector<24x32xf32>
    %257 = arith.subf %242, %256 : vector<24x32xf32>
    %cst_94 = arith.constant 9.99999974E-6 : f32
    %258 = vector.broadcast %cst_94 : f32 to vector<24x1xf32>
    %259 = arith.addf %255, %258 : vector<24x1xf32>
    %260 = math.rsqrt %259 : vector<24x1xf32>
    %261 = vector.broadcast %260 : vector<24x1xf32> to vector<24x32xf32>
    %262 = arith.mulf %257, %261 : vector<24x32xf32>
    %263 = vector.broadcast %243 : vector<1x32xf32> to vector<24x32xf32>
    %264 = arith.mulf %262, %263 : vector<24x32xf32>
    %265 = vector.broadcast %244 : vector<1x32xf32> to vector<24x32xf32>
    %266 = arith.addf %264, %265 : vector<24x32xf32>
    %cst_95 = arith.constant 5.65685415 : f32
    %267 = vector.broadcast %cst_95 : f32 to vector<24x32xf32>
    %268 = arith.mulf %266, %267 : vector<24x32xf32>
    %c0_96 = arith.constant 0 : index
    %c0_97 = arith.constant 0 : index
    %269 = vector.load %arg3[%c0_96, %c0_97] : memref<24x24xf32, #tpu.memory_space<vmem>>, vector<24x24xf32>
    %c2_98 = arith.constant 2 : index
    %c0_99 = arith.constant 0 : index
    %270 = vector.load %arg17[%c2_98, %c0_99] : memref<5x32xf32, #tpu.memory_space<vmem>>, vector<1x32xf32>
    %271 = arith.mulf %268, %268 : vector<24x32xf32>
    %cst_100 = arith.constant dense<0.000000e+00> : vector<24xf32>
    %272 = vector.multi_reduction <add>, %271, %cst_100 [1] : vector<24x32xf32> to vector<24xf32>
    %273 = vector.shape_cast %272 : vector<24xf32> to vector<24x1xf32>
    %cst_101 = arith.constant 3.200000e+01 : f32
    %274 = vector.broadcast %cst_101 : f32 to vector<24x1xf32>
    %275 = arith.divf %273, %274 : vector<24x1xf32>
    %cst_102 = arith.constant 9.99999997E-7 : f32
    %276 = vector.broadcast %cst_102 : f32 to vector<24x1xf32>
    %277 = arith.addf %275, %276 : vector<24x1xf32>
    %278 = math.rsqrt %277 : vector<24x1xf32>
    %279 = vector.broadcast %278 : vector<24x1xf32> to vector<24x32xf32>
    %280 = arith.mulf %268, %279 : vector<24x32xf32>
    %cst_103 = arith.constant 1.000000e+00 : f32
    %281 = vector.broadcast %cst_103 : f32 to vector<1x32xf32>
    %282 = arith.addf %281, %270 : vector<1x32xf32>
    %283 = vector.broadcast %282 : vector<1x32xf32> to vector<24x32xf32>
    %284 = arith.mulf %280, %283 : vector<24x32xf32>
    %c0_104 = arith.constant 0 : index
    %c0_105 = arith.constant 0 : index
    %285 = vector.load %arg18[%c0_104, %c0_105] : memref<32x96xbf16, #tpu.memory_space<vmem>>, vector<32x96xbf16>
    %286 = arith.truncf %284 : vector<24x32xf32> to vector<24x32xbf16>
    %cst_106 = arith.constant dense<0.000000e+00> : vector<24x96xf32>
    %287 = tpu.matmul %286, %285, %cst_106 {dimension_numbers = #tpu.dot_dimension_numbers<[1], [0], [0], [1], [0, 0, 1, 1], [], []>} : vector<24x32xbf16>, vector<32x96xbf16>, vector<24x96xf32> -> vector<24x96xf32>
    %288 = vector.extract_strided_slice %287 {offsets = [0, 0], sizes = [24, 32], strides = [1, 1]} : vector<24x96xf32> to vector<24x32xf32>
    %289 = vector.extract_strided_slice %287 {offsets = [0, 32], sizes = [24, 32], strides = [1, 1]} : vector<24x96xf32> to vector<24x32xf32>
    %290 = vector.extract_strided_slice %287 {offsets = [0, 64], sizes = [24, 32], strides = [1, 1]} : vector<24x96xf32> to vector<24x32xf32>
    %c0_107 = arith.constant 0 : index
    %c0_108 = arith.constant 0 : index
    %291 = vector.load %arg19[%c0_107, %c0_108] : memref<32x32xbf16, #tpu.memory_space<vmem>>, vector<32x32xbf16>
    %292 = vector.extract_strided_slice %288 {offsets = [0, 0], sizes = [24, 8], strides = [1, 1]} : vector<24x32xf32> to vector<24x8xf32>
    %293 = vector.extract_strided_slice %289 {offsets = [0, 0], sizes = [24, 8], strides = [1, 1]} : vector<24x32xf32> to vector<24x8xf32>
    %294 = arith.truncf %292 : vector<24x8xf32> to vector<24x8xbf16>
    %295 = arith.truncf %293 : vector<24x8xf32> to vector<24x8xbf16>
    %cst_109 = arith.constant dense<0.000000e+00> : vector<24x24xf32>
    %296 = tpu.matmul %294, %295, %cst_109 {dimension_numbers = #tpu.dot_dimension_numbers<[1], [1], [0], [0], [0, 0, 1, 0], [], []>} : vector<24x8xbf16>, vector<24x8xbf16>, vector<24x24xf32> -> vector<24x24xf32>
    %cst_110 = arith.constant 0.353553385 : f32
    %297 = vector.broadcast %cst_110 : f32 to vector<24x24xf32>
    %298 = arith.mulf %296, %297 : vector<24x24xf32>
    %299 = arith.addf %298, %269 : vector<24x24xf32>
    %cst_111 = arith.constant dense<0xFF800000> : vector<24xf32>
    %300 = vector.multi_reduction <maximumf>, %299, %cst_111 [1] : vector<24x24xf32> to vector<24xf32>
    %301 = vector.shape_cast %300 : vector<24xf32> to vector<24x1xf32>
    %302 = vector.broadcast %301 : vector<24x1xf32> to vector<24x24xf32>
    %303 = arith.subf %299, %302 : vector<24x24xf32>
    %304 = math.exp %303 : vector<24x24xf32>
    %cst_112 = arith.constant dense<0.000000e+00> : vector<24xf32>
    %305 = vector.multi_reduction <add>, %304, %cst_112 [1] : vector<24x24xf32> to vector<24xf32>
    %306 = vector.shape_cast %305 : vector<24xf32> to vector<24x1xf32>
    %307 = tpu.reciprocal %306 {approx = true} : vector<24x1xf32> -> vector<24x1xf32>
    %308 = vector.broadcast %307 : vector<24x1xf32> to vector<24x24xf32>
    %309 = arith.mulf %304, %308 : vector<24x24xf32>
    %310 = vector.extract_strided_slice %290 {offsets = [0, 0], sizes = [24, 8], strides = [1, 1]} : vector<24x32xf32> to vector<24x8xf32>
    %311 = arith.truncf %309 : vector<24x24xf32> to vector<24x24xbf16>
    %312 = arith.truncf %310 : vector<24x8xf32> to vector<24x8xbf16>
    %cst_113 = arith.constant dense<0.000000e+00> : vector<24x8xf32>
    %313 = tpu.matmul %311, %312, %cst_113 {dimension_numbers = #tpu.dot_dimension_numbers<[1], [0], [0], [1], [0, 0, 1, 1], [], []>} : vector<24x24xbf16>, vector<24x8xbf16>, vector<24x8xf32> -> vector<24x8xf32>
    %314 = vector.extract_strided_slice %288 {offsets = [0, 8], sizes = [24, 8], strides = [1, 1]} : vector<24x32xf32> to vector<24x8xf32>
    %315 = vector.extract_strided_slice %289 {offsets = [0, 8], sizes = [24, 8], strides = [1, 1]} : vector<24x32xf32> to vector<24x8xf32>
    %316 = arith.truncf %314 : vector<24x8xf32> to vector<24x8xbf16>
    %317 = arith.truncf %315 : vector<24x8xf32> to vector<24x8xbf16>
    %cst_114 = arith.constant dense<0.000000e+00> : vector<24x24xf32>
    %318 = tpu.matmul %316, %317, %cst_114 {dimension_numbers = #tpu.dot_dimension_numbers<[1], [1], [0], [0], [0, 0, 1, 0], [], []>} : vector<24x8xbf16>, vector<24x8xbf16>, vector<24x24xf32> -> vector<24x24xf32>
    %cst_115 = arith.constant 0.353553385 : f32
    %319 = vector.broadcast %cst_115 : f32 to vector<24x24xf32>
    %320 = arith.mulf %318, %319 : vector<24x24xf32>
    %321 = arith.addf %320, %269 : vector<24x24xf32>
    %cst_116 = arith.constant dense<0xFF800000> : vector<24xf32>
    %322 = vector.multi_reduction <maximumf>, %321, %cst_116 [1] : vector<24x24xf32> to vector<24xf32>
    %323 = vector.shape_cast %322 : vector<24xf32> to vector<24x1xf32>
    %324 = vector.broadcast %323 : vector<24x1xf32> to vector<24x24xf32>
    %325 = arith.subf %321, %324 : vector<24x24xf32>
    %326 = math.exp %325 : vector<24x24xf32>
    %cst_117 = arith.constant dense<0.000000e+00> : vector<24xf32>
    %327 = vector.multi_reduction <add>, %326, %cst_117 [1] : vector<24x24xf32> to vector<24xf32>
    %328 = vector.shape_cast %327 : vector<24xf32> to vector<24x1xf32>
    %329 = tpu.reciprocal %328 {approx = true} : vector<24x1xf32> -> vector<24x1xf32>
    %330 = vector.broadcast %329 : vector<24x1xf32> to vector<24x24xf32>
    %331 = arith.mulf %326, %330 : vector<24x24xf32>
    %332 = vector.extract_strided_slice %290 {offsets = [0, 8], sizes = [24, 8], strides = [1, 1]} : vector<24x32xf32> to vector<24x8xf32>
    %333 = arith.truncf %331 : vector<24x24xf32> to vector<24x24xbf16>
    %334 = arith.truncf %332 : vector<24x8xf32> to vector<24x8xbf16>
    %cst_118 = arith.constant dense<0.000000e+00> : vector<24x8xf32>
    %335 = tpu.matmul %333, %334, %cst_118 {dimension_numbers = #tpu.dot_dimension_numbers<[1], [0], [0], [1], [0, 0, 1, 1], [], []>} : vector<24x24xbf16>, vector<24x8xbf16>, vector<24x8xf32> -> vector<24x8xf32>
    %336 = vector.extract_strided_slice %288 {offsets = [0, 16], sizes = [24, 8], strides = [1, 1]} : vector<24x32xf32> to vector<24x8xf32>
    %337 = vector.extract_strided_slice %289 {offsets = [0, 16], sizes = [24, 8], strides = [1, 1]} : vector<24x32xf32> to vector<24x8xf32>
    %338 = arith.truncf %336 : vector<24x8xf32> to vector<24x8xbf16>
    %339 = arith.truncf %337 : vector<24x8xf32> to vector<24x8xbf16>
    %cst_119 = arith.constant dense<0.000000e+00> : vector<24x24xf32>
    %340 = tpu.matmul %338, %339, %cst_119 {dimension_numbers = #tpu.dot_dimension_numbers<[1], [1], [0], [0], [0, 0, 1, 0], [], []>} : vector<24x8xbf16>, vector<24x8xbf16>, vector<24x24xf32> -> vector<24x24xf32>
    %cst_120 = arith.constant 0.353553385 : f32
    %341 = vector.broadcast %cst_120 : f32 to vector<24x24xf32>
    %342 = arith.mulf %340, %341 : vector<24x24xf32>
    %343 = arith.addf %342, %269 : vector<24x24xf32>
    %cst_121 = arith.constant dense<0xFF800000> : vector<24xf32>
    %344 = vector.multi_reduction <maximumf>, %343, %cst_121 [1] : vector<24x24xf32> to vector<24xf32>
    %345 = vector.shape_cast %344 : vector<24xf32> to vector<24x1xf32>
    %346 = vector.broadcast %345 : vector<24x1xf32> to vector<24x24xf32>
    %347 = arith.subf %343, %346 : vector<24x24xf32>
    %348 = math.exp %347 : vector<24x24xf32>
    %cst_122 = arith.constant dense<0.000000e+00> : vector<24xf32>
    %349 = vector.multi_reduction <add>, %348, %cst_122 [1] : vector<24x24xf32> to vector<24xf32>
    %350 = vector.shape_cast %349 : vector<24xf32> to vector<24x1xf32>
    %351 = tpu.reciprocal %350 {approx = true} : vector<24x1xf32> -> vector<24x1xf32>
    %352 = vector.broadcast %351 : vector<24x1xf32> to vector<24x24xf32>
    %353 = arith.mulf %348, %352 : vector<24x24xf32>
    %354 = vector.extract_strided_slice %290 {offsets = [0, 16], sizes = [24, 8], strides = [1, 1]} : vector<24x32xf32> to vector<24x8xf32>
    %355 = arith.truncf %353 : vector<24x24xf32> to vector<24x24xbf16>
    %356 = arith.truncf %354 : vector<24x8xf32> to vector<24x8xbf16>
    %cst_123 = arith.constant dense<0.000000e+00> : vector<24x8xf32>
    %357 = tpu.matmul %355, %356, %cst_123 {dimension_numbers = #tpu.dot_dimension_numbers<[1], [0], [0], [1], [0, 0, 1, 1], [], []>} : vector<24x24xbf16>, vector<24x8xbf16>, vector<24x8xf32> -> vector<24x8xf32>
    %358 = vector.extract_strided_slice %288 {offsets = [0, 24], sizes = [24, 8], strides = [1, 1]} : vector<24x32xf32> to vector<24x8xf32>
    %359 = vector.extract_strided_slice %289 {offsets = [0, 24], sizes = [24, 8], strides = [1, 1]} : vector<24x32xf32> to vector<24x8xf32>
    %360 = arith.truncf %358 : vector<24x8xf32> to vector<24x8xbf16>
    %361 = arith.truncf %359 : vector<24x8xf32> to vector<24x8xbf16>
    %cst_124 = arith.constant dense<0.000000e+00> : vector<24x24xf32>
    %362 = tpu.matmul %360, %361, %cst_124 {dimension_numbers = #tpu.dot_dimension_numbers<[1], [1], [0], [0], [0, 0, 1, 0], [], []>} : vector<24x8xbf16>, vector<24x8xbf16>, vector<24x24xf32> -> vector<24x24xf32>
    %cst_125 = arith.constant 0.353553385 : f32
    %363 = vector.broadcast %cst_125 : f32 to vector<24x24xf32>
    %364 = arith.mulf %362, %363 : vector<24x24xf32>
    %365 = arith.addf %364, %269 : vector<24x24xf32>
    %cst_126 = arith.constant dense<0xFF800000> : vector<24xf32>
    %366 = vector.multi_reduction <maximumf>, %365, %cst_126 [1] : vector<24x24xf32> to vector<24xf32>
    %367 = vector.shape_cast %366 : vector<24xf32> to vector<24x1xf32>
    %368 = vector.broadcast %367 : vector<24x1xf32> to vector<24x24xf32>
    %369 = arith.subf %365, %368 : vector<24x24xf32>
    %370 = math.exp %369 : vector<24x24xf32>
    %cst_127 = arith.constant dense<0.000000e+00> : vector<24xf32>
    %371 = vector.multi_reduction <add>, %370, %cst_127 [1] : vector<24x24xf32> to vector<24xf32>
    %372 = vector.shape_cast %371 : vector<24xf32> to vector<24x1xf32>
    %373 = tpu.reciprocal %372 {approx = true} : vector<24x1xf32> -> vector<24x1xf32>
    %374 = vector.broadcast %373 : vector<24x1xf32> to vector<24x24xf32>
    %375 = arith.mulf %370, %374 : vector<24x24xf32>
    %376 = vector.extract_strided_slice %290 {offsets = [0, 24], sizes = [24, 8], strides = [1, 1]} : vector<24x32xf32> to vector<24x8xf32>
    %377 = arith.truncf %375 : vector<24x24xf32> to vector<24x24xbf16>
    %378 = arith.truncf %376 : vector<24x8xf32> to vector<24x8xbf16>
    %cst_128 = arith.constant dense<0.000000e+00> : vector<24x8xf32>
    %379 = tpu.matmul %377, %378, %cst_128 {dimension_numbers = #tpu.dot_dimension_numbers<[1], [0], [0], [1], [0, 0, 1, 1], [], []>} : vector<24x24xbf16>, vector<24x8xbf16>, vector<24x8xf32> -> vector<24x8xf32>
    %380 = tpu.concatenate %313, %335, %357, %379 in 1 : vector<24x8xf32>, vector<24x8xf32>, vector<24x8xf32>, vector<24x8xf32> -> vector<24x32xf32>
    %381 = arith.truncf %380 : vector<24x32xf32> to vector<24x32xbf16>
    %cst_129 = arith.constant dense<0.000000e+00> : vector<24x32xf32>
    %382 = tpu.matmul %381, %291, %cst_129 {dimension_numbers = #tpu.dot_dimension_numbers<[1], [0], [0], [1], [0, 0, 1, 1], [], []>} : vector<24x32xbf16>, vector<32x32xbf16>, vector<24x32xf32> -> vector<24x32xf32>
    %383 = arith.addf %268, %382 : vector<24x32xf32>
    %c3_130 = arith.constant 3 : index
    %c0_131 = arith.constant 0 : index
    %384 = vector.load %arg17[%c3_130, %c0_131] : memref<5x32xf32, #tpu.memory_space<vmem>>, vector<1x32xf32>
    %385 = arith.mulf %383, %383 : vector<24x32xf32>
    %cst_132 = arith.constant dense<0.000000e+00> : vector<24xf32>
    %386 = vector.multi_reduction <add>, %385, %cst_132 [1] : vector<24x32xf32> to vector<24xf32>
    %387 = vector.shape_cast %386 : vector<24xf32> to vector<24x1xf32>
    %cst_133 = arith.constant 3.200000e+01 : f32
    %388 = vector.broadcast %cst_133 : f32 to vector<24x1xf32>
    %389 = arith.divf %387, %388 : vector<24x1xf32>
    %cst_134 = arith.constant 9.99999997E-7 : f32
    %390 = vector.broadcast %cst_134 : f32 to vector<24x1xf32>
    %391 = arith.addf %389, %390 : vector<24x1xf32>
    %392 = math.rsqrt %391 : vector<24x1xf32>
    %393 = vector.broadcast %392 : vector<24x1xf32> to vector<24x32xf32>
    %394 = arith.mulf %383, %393 : vector<24x32xf32>
    %cst_135 = arith.constant 1.000000e+00 : f32
    %395 = vector.broadcast %cst_135 : f32 to vector<1x32xf32>
    %396 = arith.addf %395, %384 : vector<1x32xf32>
    %397 = vector.broadcast %396 : vector<1x32xf32> to vector<24x32xf32>
    %398 = arith.mulf %394, %397 : vector<24x32xf32>
    %c0_136 = arith.constant 0 : index
    %c0_137 = arith.constant 0 : index
    %399 = vector.load %arg20[%c0_136, %c0_137] : memref<32x64xbf16, #tpu.memory_space<vmem>>, vector<32x64xbf16>
    %400 = arith.truncf %398 : vector<24x32xf32> to vector<24x32xbf16>
    %cst_138 = arith.constant dense<0.000000e+00> : vector<24x64xf32>
    %401 = tpu.matmul %400, %399, %cst_138 {dimension_numbers = #tpu.dot_dimension_numbers<[1], [0], [0], [1], [0, 0, 1, 1], [], []>} : vector<24x32xbf16>, vector<32x64xbf16>, vector<24x64xf32> -> vector<24x64xf32>
    %402 = arith.mulf %401, %401 : vector<24x64xf32>
    %403 = arith.mulf %401, %402 : vector<24x64xf32>
    %cst_139 = arith.constant 4.471500e-02 : f32
    %404 = vector.broadcast %cst_139 : f32 to vector<24x64xf32>
    %405 = arith.mulf %404, %403 : vector<24x64xf32>
    %406 = arith.addf %401, %405 : vector<24x64xf32>
    %cst_140 = arith.constant 0.797884583 : f32
    %407 = vector.broadcast %cst_140 : f32 to vector<24x64xf32>
    %408 = arith.mulf %407, %406 : vector<24x64xf32>
    %409 = math.tanh %408 : vector<24x64xf32>
    %cst_141 = arith.constant 1.000000e+00 : f32
    %410 = vector.broadcast %cst_141 : f32 to vector<24x64xf32>
    %411 = arith.addf %410, %409 : vector<24x64xf32>
    %cst_142 = arith.constant 5.000000e-01 : f32
    %412 = vector.broadcast %cst_142 : f32 to vector<24x64xf32>
    %413 = arith.mulf %412, %411 : vector<24x64xf32>
    %414 = arith.mulf %401, %413 : vector<24x64xf32>
    %c0_143 = arith.constant 0 : index
    %c0_144 = arith.constant 0 : index
    %415 = vector.load %arg21[%c0_143, %c0_144] : memref<32x64xbf16, #tpu.memory_space<vmem>>, vector<32x64xbf16>
    %416 = arith.truncf %398 : vector<24x32xf32> to vector<24x32xbf16>
    %cst_145 = arith.constant dense<0.000000e+00> : vector<24x64xf32>
    %417 = tpu.matmul %416, %415, %cst_145 {dimension_numbers = #tpu.dot_dimension_numbers<[1], [0], [0], [1], [0, 0, 1, 1], [], []>} : vector<24x32xbf16>, vector<32x64xbf16>, vector<24x64xf32> -> vector<24x64xf32>
    %418 = arith.mulf %414, %417 : vector<24x64xf32>
    %c0_146 = arith.constant 0 : index
    %c0_147 = arith.constant 0 : index
    %419 = vector.load %arg22[%c0_146, %c0_147] : memref<64x32xbf16, #tpu.memory_space<vmem>>, vector<64x32xbf16>
    %420 = arith.truncf %418 : vector<24x64xf32> to vector<24x64xbf16>
    %cst_148 = arith.constant dense<0.000000e+00> : vector<24x32xf32>
    %421 = tpu.matmul %420, %419, %cst_148 {dimension_numbers = #tpu.dot_dimension_numbers<[1], [0], [0], [1], [0, 0, 1, 1], [], []>} : vector<24x64xbf16>, vector<64x32xbf16>, vector<24x32xf32> -> vector<24x32xf32>
    %422 = arith.addf %383, %421 : vector<24x32xf32>
    %c4_149 = arith.constant 4 : index
    %c0_150 = arith.constant 0 : index
    %423 = vector.load %arg17[%c4_149, %c0_150] : memref<5x32xf32, #tpu.memory_space<vmem>>, vector<1x32xf32>
    %424 = arith.mulf %422, %422 : vector<24x32xf32>
    %cst_151 = arith.constant dense<0.000000e+00> : vector<24xf32>
    %425 = vector.multi_reduction <add>, %424, %cst_151 [1] : vector<24x32xf32> to vector<24xf32>
    %426 = vector.shape_cast %425 : vector<24xf32> to vector<24x1xf32>
    %cst_152 = arith.constant 3.200000e+01 : f32
    %427 = vector.broadcast %cst_152 : f32 to vector<24x1xf32>
    %428 = arith.divf %426, %427 : vector<24x1xf32>
    %cst_153 = arith.constant 9.99999997E-7 : f32
    %429 = vector.broadcast %cst_153 : f32 to vector<24x1xf32>
    %430 = arith.addf %428, %429 : vector<24x1xf32>
    %431 = math.rsqrt %430 : vector<24x1xf32>
    %432 = vector.broadcast %431 : vector<24x1xf32> to vector<24x32xf32>
    %433 = arith.mulf %422, %432 : vector<24x32xf32>
    %cst_154 = arith.constant 1.000000e+00 : f32
    %434 = vector.broadcast %cst_154 : f32 to vector<1x32xf32>
    %435 = arith.addf %434, %423 : vector<1x32xf32>
    %436 = vector.broadcast %435 : vector<1x32xf32> to vector<24x32xf32>
    %437 = arith.mulf %433, %436 : vector<24x32xf32>
    %c0_155 = arith.constant 0 : index
    %c0_156 = arith.constant 0 : index
    %438 = vector.load %arg16[%c0_155, %c0_156] : memref<128x32xbf16, #tpu.memory_space<vmem>>, vector<128x32xbf16>
    %439 = arith.truncf %437 : vector<24x32xf32> to vector<24x32xbf16>
    %cst_157 = arith.constant dense<0.000000e+00> : vector<24x128xf32>
    %440 = tpu.matmul %439, %438, %cst_157 {dimension_numbers = #tpu.dot_dimension_numbers<[1], [1], [0], [0], [0, 0, 1, 0], [], []>} : vector<24x32xbf16>, vector<128x32xbf16>, vector<24x128xf32> -> vector<24x128xf32>
    %c0_158 = arith.constant 0 : index
    %c0_159 = arith.constant 0 : index
    %441 = vector.load %arg23[%c0_158, %c0_159] : memref<24x128xf32, #tpu.memory_space<vmem>>, vector<24x128xf32>
    tpu.vector_store %arg23[%c0_158, %c0_159], %440 {strides = array<i32>} : memref<24x128xf32, #tpu.memory_space<vmem>>, vector<24x128xf32>,
    return
  }
  func.func @transform_0(%arg0: i32) -> (i32, i32) {
    %c0_i32 = arith.constant 0 : i32
    %c0_i32_0 = arith.constant 0 : i32
    %c0_i32_1 = arith.constant 0 : i32
    return %c0_i32, %c0_i32_0 : i32, i32
  }
  func.func @transform_1(%arg0: i32) -> (i32, i32) {
    %c0_i32 = arith.constant 0 : i32
    %c0_i32_0 = arith.constant 0 : i32
    %c0_i32_1 = arith.constant 0 : i32
    return %c0_i32, %c0_i32_0 : i32, i32
  }
  func.func @transform_2(%arg0: i32) -> (i32, i32) {
    %c0_i32 = arith.constant 0 : i32
    %c0_i32_0 = arith.constant 0 : i32
    %c0_i32_1 = arith.constant 0 : i32
    return %c0_i32, %c0_i32_0 : i32, i32
  }
  func.func @transform_3(%arg0: i32) -> (i32, i32) {
    %c0_i32 = arith.constant 0 : i32
    %c0_i32_0 = arith.constant 0 : i32
    %c0_i32_1 = arith.constant 0 : i32
    return %c0_i32, %c0_i32_0 : i32, i32
  }
  func.func @transform_4(%arg0: i32) -> (i32, i32) {
    %c0_i32 = arith.constant 0 : i32
    %c0_i32_0 = arith.constant 0 : i32
    %c0_i32_1 = arith.constant 0 : i32
    return %c0_i32, %c0_i32_0 : i32, i32
  }
  func.func @transform_5(%arg0: i32) -> (i32, i32) {
    %c0_i32 = arith.constant 0 : i32
    %c0_i32_0 = arith.constant 0 : i32
    %c0_i32_1 = arith.constant 0 : i32
    return %c0_i32, %c0_i32_0 : i32, i32
  }
  func.func @transform_6(%arg0: i32) -> (i32, i32) {
    %c0_i32 = arith.constant 0 : i32
    %c0_i32_0 = arith.constant 0 : i32
    %c0_i32_1 = arith.constant 0 : i32
    return %c0_i32, %c0_i32_0 : i32, i32
  }
  func.func @transform_7(%arg0: i32) -> (i32, i32) {
    %c0_i32 = arith.constant 0 : i32
    %c0_i32_0 = arith.constant 0 : i32
    %c0_i32_1 = arith.constant 0 : i32
    return %c0_i32, %c0_i32_0 : i32, i32
  }
  func.func @transform_8(%arg0: i32) -> (i32, i32) {
    %c0_i32 = arith.constant 0 : i32
    %c0_i32_0 = arith.constant 0 : i32
    %c0_i32_1 = arith.constant 0 : i32
    return %c0_i32, %c0_i32_0 : i32, i32
  }
  func.func @transform_9(%arg0: i32) -> (i32, i32) {
    %c0_i32 = arith.constant 0 : i32
    %c0_i32_0 = arith.constant 0 : i32
    %c0_i32_1 = arith.constant 0 : i32
    return %c0_i32, %c0_i32_0 : i32, i32
  }
  func.func @transform_10(%arg0: i32) -> (i32, i32) {
    %c0_i32 = arith.constant 0 : i32
    %c0_i32_0 = arith.constant 0 : i32
    %c0_i32_1 = arith.constant 0 : i32
    return %c0_i32, %c0_i32_0 : i32, i32
  }
  func.func @transform_11(%arg0: i32) -> (i32, i32) {
    %c0_i32 = arith.constant 0 : i32
    %c0_i32_0 = arith.constant 0 : i32
    %c0_i32_1 = arith.constant 0 : i32
    return %c0_i32, %c0_i32_0 : i32, i32
  }
  func.func @transform_12(%arg0: i32) -> (i32, i32) {
    %c0_i32 = arith.constant 0 : i32
    %c0_i32_0 = arith.constant 0 : i32
    %c0_i32_1 = arith.constant 0 : i32
    return %c0_i32, %c0_i32_0 : i32, i32
  }
  func.func @transform_13(%arg0: i32) -> (i32, i32) {
    %c0_i32 = arith.constant 0 : i32
    %c0_i32_0 = arith.constant 0 : i32
    %c0_i32_1 = arith.constant 0 : i32
    return %c0_i32, %c0_i32_0 : i32, i32
  }
  func.func @transform_14(%arg0: i32) -> (i32, i32) {
    %c0_i32 = arith.constant 0 : i32
    %c0_i32_0 = arith.constant 0 : i32
    %c0_i32_1 = arith.constant 0 : i32
    return %c0_i32, %c0_i32_0 : i32, i32
  }
  func.func @transform_15(%arg0: i32) -> (i32, i32) {
    %c0_i32 = arith.constant 0 : i32
    %c0_i32_0 = arith.constant 0 : i32
    %c0_i32_1 = arith.constant 0 : i32
    return %c0_i32, %c0_i32_0 : i32, i32
  }
  func.func @transform_16(%arg0: i32) -> (i32, i32) {
    %c0_i32 = arith.constant 0 : i32
    %c0_i32_0 = arith.constant 0 : i32
    %c0_i32_1 = arith.constant 0 : i32
    return %c0_i32, %c0_i32_0 : i32, i32
  }
  func.func @transform_17(%arg0: i32) -> (i32, i32) {
    %c0_i32 = arith.constant 0 : i32
    %c0_i32_0 = arith.constant 0 : i32
    %c0_i32_1 = arith.constant 0 : i32
    return %c0_i32, %c0_i32_0 : i32, i32
  }
  func.func @transform_18(%arg0: i32) -> (i32, i32) {
    %c0_i32 = arith.constant 0 : i32
    %c0_i32_0 = arith.constant 0 : i32
    %c0_i32_1 = arith.constant 0 : i32
    return %c0_i32, %c0_i32_0 : i32, i32
  }
  func.func @transform_19(%arg0: i32) -> (i32, i32) {
    %c0_i32 = arith.constant 0 : i32
    %c0_i32_0 = arith.constant 0 : i32
    %c0_i32_1 = arith.constant 0 : i32
    return %c0_i32, %c0_i32_0 : i32, i32
  }
  func.func @transform_20(%arg0: i32) -> (i32, i32) {
    %c0_i32 = arith.constant 0 : i32
    %c0_i32_0 = arith.constant 0 : i32
    %c0_i32_1 = arith.constant 0 : i32
    return %c0_i32, %c0_i32_0 : i32, i32
  }
  func.func @transform_21(%arg0: i32) -> (i32, i32) {
    %c0_i32 = arith.constant 0 : i32
    %c0_i32_0 = arith.constant 0 : i32
    %c0_i32_1 = arith.constant 0 : i32
    return %c0_i32, %c0_i32_0 : i32, i32
  }
  func.func @transform_22(%arg0: i32) -> (i32, i32) {
    %c0_i32 = arith.constant 0 : i32
    %c0_i32_0 = arith.constant 0 : i32
    %c0_i32_1 = arith.constant 0 : i32
    return %c0_i32, %c0_i32_0 : i32, i32
  }
}

</mosaic_0001>

<bundles_post_ra>
// kernel: tpu_custom_call.1
= control target key start
LH: loop header
LB: loop body
LE: loop exit
PB: predicated region body
PF: predicated region fallthrough
CT: control target
= control target key end

     0   :  { %s4128_s0 = inlined_call_operand.vmem [shape: f32[8,192], index: 0, kind: input, shape index: {}]   ;;  %s4129_s1 = inlined_call_operand.vmem [shape: s32[16,1], index: 1, kind: input, shape index: {}]   ;;  %s4130_s2 = inlined_call_operand.vmem [shape: f32[24,24], index: 2, kind: input, shape index: {}]   ;;  %s4131_s3 = inlined_call_operand.vmem [shape: bf16[192,32], index: 3, kind: input, shape index: {}]   ;;  %s4132_s4 = inlined_call_operand.vmem [shape: f32[4,32], index: 4, kind: input, shape index: {}]   ;;  %s4133_s5 = inlined_call_operand.vmem [shape: f32[6,32], index: 5, kind: input, shape index: {}]   ;;  %s4134_s6 = inlined_call_operand.vmem [shape: bf16[32,96], index: 6, kind: input, shape index: {}]   ;;  %s4135_s7 = inlined_call_operand.vmem [shape: f32[1,96], index: 7, kind: input, shape index: {}]   ;;  %s4136_s8 = inlined_call_operand.vmem [shape: bf16[32,32], index: 8, kind: input, shape index: {}]   ;;  %s4137_s9 = inlined_call_operand.vmem [shape: bf16[32,64], index: 9, kind: input, shape index: {}]   ;;  %s4138_s10 = inlined_call_operand.vmem [shape: f32[1,64], index: 10, kind: input, shape index: {}]   ;;  %s4139_s11 = inlined_call_operand.vmem [shape: bf16[64,32], index: 11, kind: input, shape index: {}]   ;;  %s4140_s12 = inlined_call_operand.vmem [shape: f32[3,32], index: 12, kind: input, shape index: {}]   ;;  %s4141_s13 = inlined_call_operand.vmem [shape: bf16[32,32], index: 13, kind: input, shape index: {}]   ;;  %s4142_s14 = inlined_call_operand.vmem [shape: f32[1,32], index: 14, kind: input, shape index: {}]   ;;  %s4143_s15 = inlined_call_operand.vmem [shape: bf16[128,32], index: 15, kind: input, shape index: {}]   ;;  %s4144_s16 = inlined_call_operand.vmem [shape: f32[5,32], index: 16, kind: input, shape index: {}]   ;;  %s4145_s17 = inlined_call_operand.vmem [shape: bf16[32,96], index: 17, kind: input, shape index: {}]   ;;  %s4146_s18 = inlined_call_operand.vmem [shape: bf16[32,32], index: 18, kind: input, shape index: {}]   ;;  %s4147_s19 = inlined_call_operand.vmem [shape: bf16[32,64], index: 19, kind: input, shape index: {}]   ;;  %s4148_s20 = inlined_call_operand.vmem [shape: bf16[32,64], index: 20, kind: input, shape index: {}]   ;;  %s4149_s21 = inlined_call_operand.vmem [shape: bf16[64,32], index: 21, kind: input, shape index: {}]   ;;  %s4150_s22 = inlined_call_operand.hbm [shape: f32[24,128], index: 22, kind: output, shape index: {}]  }
   0x1   :  { %4165 = sst [smem:[#allocation5_spill]] %s4128_s0 }
   0x2   :  { %4166 = sst [smem:[#allocation6_spill]] %s4129_s1 }
   0x3   :  { %4167 = sst [smem:[#allocation7_spill]] %s4130_s2 }
   0x4   :  { %4168 = sst [smem:[#allocation8_spill]] %s4131_s3 }
   0x5   :  { %4169 = sst [smem:[#allocation9_spill]] %s4132_s4 }
   0x6   :  { %4170 = sst [smem:[#allocation10_spill]] %s4133_s5 }
   0x7   :  { %4171 = sst [smem:[#allocation11_spill]] %s4134_s6 }
   0x8   :  { %s4172_s29 = sld [smem:[#allocation8_spill]]  ;;  %v3343_v1 = vmov 0   ;;  %s4173_s2 = sld [smem:[#allocation5_spill]]  ;;  %vm178_vm0 = vcmask 523264  }
   0x9   :  { %182 = vmatprep.subr.bf16.mxu0 %v3343_v1  ;;  %3149 = vset.pattern.permute.xlu1 %v3343_v1 }
   0xa   :  { %3148 = vset.pattern.permute.xlu0 %v3343_v1 }
   0xe   :  { %v3165_v0 = vld [vmem:[%s4172_s29] sm:$0xff]   ;;  %v3166_v2 = vld [vmem:[%s4172_s29 + $0x8] sm:$0xff]   ;;  %v3167_v3 = vld [vmem:[%s4172_s29 + $0x10] sm:$0xff]  }
   0xf   :  { %183 = vmatpush1.bf16.msra.mxu0 %v3165_v0  ;;  %v3168_v4 = vld [vmem:[%s4172_s29 + $0x18] sm:$0xff]   ;;  %v3169_v5 = vld [vmem:[%s4172_s29 + $0x20] sm:$0xff]   ;;  %v74_v6 = vld [vmem:[%s4173_s2 + $0x8] sm:$0xff] }
  0x10   :  { %184 = vmatprep.subr.bf16.mxu0 %v3343_v1  ;;  %v100_v7 = vpack.c.bf16 %v74_v6, %v74_v6  ;;  %v3170_v8 = vld [vmem:[%s4172_s29 + $0x28] sm:$0xff]   ;;  %v3171_v9 = vld [vmem:[%s4172_s29 + $0x30] sm:$0xff]   ;;  %v3172_v10 = vld [vmem:[%s4172_s29 + $0x38] sm:$0xff]  }
  0x11   :  { %v3173_v11 = vld [vmem:[%s4172_s29 + $0x40] sm:$0xff]   ;;  %v3174_v12 = vld [vmem:[%s4172_s29 + $0x48] sm:$0xff]  }
  0x12   :  { %2670 = vmatprep.mubr.msk.bf16.mxu0 %vm178_vm0, %v100_v7 }
  0x13   :  { %185 = vmatpush1.bf16.msra.mxu0 %v3166_v2 }
  0x14   :  { %186 = vmatprep.subr.bf16.mxu0 %v3343_v1 }
  0x17   :  { %187 = vmatpush1.bf16.msra.mxu0 %v3167_v3 }
  0x18   :  { %188 = vmatprep.subr.bf16.mxu0 %v3343_v1 }
  0x1b   :  { %189 = vmatpush1.bf16.msra.mxu0 %v3168_v4 }
  0x1c   :  { %190 = vmatprep.subr.bf16.mxu0 %v3343_v1 }
  0x1f   :  { %191 = vmatpush1.bf16.msra.mxu0 %v3169_v5 }
  0x20   :  { %192 = vmatprep.subr.bf16.mxu0 %v3343_v1 }
  0x23   :  { %193 = vmatpush1.bf16.msra.mxu0 %v3170_v8 }
  0x24   :  { %194 = vmatprep.subr.bf16.mxu0 %v3343_v1 }
  0x27   :  { %195 = vmatpush1.bf16.msra.mxu0 %v3171_v9 }
  0x28   :  { %196 = vmatprep.subr.bf16.mxu0 %v3343_v1 }
  0x2b   :  { %197 = vmatpush1.bf16.msra.mxu0 %v3172_v10 }
  0x2c   :  { %198 = vmatprep.subr.bf16.mxu0 %v3343_v1 }
  0x2f   :  { %199 = vmatpush1.bf16.msra.mxu0 %v3173_v11 }
  0x30   :  { %27 = vsyncpa [#allocation3], 0  ;;  %200 = vmatprep.subr.bf16.mxu0 %v3343_v1  ;;  %v3175_v13 = vld [vmem:[%s4172_s29 + $0x50] sm:$0xff]   ;;  %v3176_v14 = vld [vmem:[%s4172_s29 + $0x58] sm:$0xff]   ;;  %s4174_s0 = sld [smem:[#allocation9_spill]]  ;;  %vm226_vm1 = vcmask 1043456   ;;  %v229_v57 = vlaneseq }
  0x31   :  { %v73_v15 = vld [vmem:[%s4173_s2] sm:$0xff]  ;;  %vm239_vm2 = vcmask 261120   ;;  %s4175_s5 = sld [smem:[#allocation11_spill]]  ;;  %v3344_v34 = vmov 0.0   ;;  %vm3345_vm3 = vmmov 0   ;;  %s4176_s27 = sld [smem:[#allocation10_spill]] }
  0x32   :  { %v99_v16 = vpack.c.bf16 %v73_v15, %v73_v15  ;;  %v2657_v19 = vld [vmem:[%s4140_s12] ss:$0 sm:$0xff]  ;;  %2875 = vmatprep.subr.bf16.mxu1 %v3344_v34  ;;  %2877 = vmatprep.mubr.msk.bf16.mxu1 %vm3345_vm3, %v3344_v34  ;;  %s3347_s23 = smov 96   ;;  %vm339_vm4 = vcmask 64512   ;;  %v3575_v58 = vshrl.u32 %v229_v57, 7  ;;  %v3577_v59 = vand.u32 127, %v229_v57 }
  0x33   :  { %201 = vmatpush1.bf16.msra.mxu0 %v3174_v12  ;;  %v2673_v46 = vld [vmem:[%s4135_s7] ss:$0 sm:$0xff]  ;;  %v3348_v63 = vmov -1e+09   ;;  %s3349_s7 = smov 88   ;;  %s3350_s1 = smov 120  }
  0x34   :  { %202 = vmatprep.subr.bf16.mxu0 %v3343_v1  ;;  %v233_v60 = vshra.s32 %v3575_v58, 2  ;;  %v234_v61 = vshra.s32 %v3577_v59, 2  ;;  %s3351_s29 = smov 56   ;;  %s3352_s2 = smov 80   ;;  %vm797_vm6 = vcmask 130048   ;;  %vm799_vm7 = vcmask 195584  }
  0x35   :  { %s3354_s24 = smov 72   ;;  %s4161_s6 = smov 104  }
  0x36   :  { %v222_v17 = vld [vmem:[%s4174_s0] sm:$0xf]  ;;  %s3346_s0 = smov 64   ;;  %vm235_vm5 = vcmp.eq.s32.totalorder %v233_v60, %v234_v61  ;;  %s4159_s25 = smov 40  }
  0x37   :  { %203 = vmatpush1.bf16.msra.mxu0 %v3175_v13  ;;  %v224_v18 = vrot.slane %v222_v17, 4  ;;  %v3177_v33 = vld [vmem:[%s4175_s5] sm:$0xff]   ;;  %v3178_v35 = vld [vmem:[%s4175_s5 + $0x8] sm:$0xff]   ;;  %v3581_v0 = vsel %vm235_vm5, 0.0, %v3348_v63  ;;  %s3353_s5 = smov 112   ;;  %s3357_s26 = smov 48  }
  0x38   :  { %204 = vmatprep.subr.bf16.mxu0 %v3343_v1  ;;  %v2671_v40 = vld [vmem:[%s4176_s27] ss:$0 sm:$0xff]  ;;  %v2672_v42 = vld [vmem:[%s4176_s27 + $0x1] ss:$0 sm:$0xff]  ;;  %s4157_s3 = smov 8   ;;  %s4177_s28 = sld [smem:[#allocation6_spill]] }
  0x39   :  { %v227_v21 = vsel %vm226_vm1, %v222_v17, %v224_v18 }
  0x3b   :  { %205 = vmatpush1.bf16.msra.mxu0 %v3176_v14 }
  0x3c   :  { %2867 = vmatprep.subr.bf16.mxu0 %v3344_v34 }
  0x3e   :  { %215 = vmatmul.mubr.bf16.vlgmr.msra.gmra.mrb[0].mxu0 %v99_v16 }
  0x3f   :  { %2868 = vmatpush3.bf16.msra.mxu0 %v3177_v33  ;;  %2871 = vmatprep.mubr.msk.bf16.mxu0 %vm3345_vm3, %v3344_v34 }
  0x40   :  { %2869 = vmatprep.subr.bf16.mxu0 %v3344_v34 }
  0x43   :  { %2870 = vmatpush3.bf16.msra.mxu0 %v3178_v35 }
  0x44   :  { %2905 = vmatprep.subr.bf16.mxu0 %v3344_v34 }
 0x111   :  { %v216_v20 = vpop.f32.mrb[0].mxu0 }
 0x112   :  { %v217_v22 = vadd.f32 %v2657_v19, %v216_v20  ;;  %v218_v23 = vpop.f32.mrb[1].mxu0 }
 0x113   :  { %v219_v24 = vpop.f32.mrb[2].mxu0 }
 0x114   :  { %v3529_v25 = vadd.f32 %v227_v21, %v217_v22  ;;  %v220_v26 = vpop.f32.mrb[3].mxu0 }
 0x116   :  { %v240_v27 = vsel %vm239_vm2, %v3529_v25, 0.0 }
 0x117   :  { %241 = vadd.xlane.f32.xlu0 %v240_v27 }
 0x1a4   :  { %v242_v28 = vpop.xlane.xlu0 %241 }
 0x1a5   :  { %v244_v29 = vmul.f32 0.03125, %v242_v28 }
 0x1a7   :  { %v245_v30 = vsub.f32 %v3529_v25, %v244_v29 }
 0x1a9   :  { %v246_v31 = vmul.f32 %v245_v30, %v245_v30 }
 0x1ab   :  { %v247_v32 = vsel %vm239_vm2, %v246_v31, 0.0 }
 0x1ac   :  { %248 = vadd.xlane.f32.xlu0 %v247_v32 }
 0x239   :  { %v249_v36 = vpop.xlane.xlu0 %248 }
 0x23a   :  { %v250_v37 = vmul.f32 0.03125, %v249_v36 }
 0x23c   :  { %v251_v38 = vadd.f32 1e-06, %v250_v37 }
 0x23e   :  { %3209 = vrsqrt.f32 %v251_v38 }
 0x248   :  { %v3210_v39 = vpop.eup %3209 }
 0x249   :  { %v253_v41 = vmul.f32 %v3210_v39, %v245_v30 }
 0x24b   :  { %v258_v43 = vmul.f32 %v2671_v40, %v253_v41 }
 0x24d   :  { %v263_v44 = vadd.f32 %v2672_v42, %v258_v43 }
 0x24f   :  { %v268_v45 = vpack.c.bf16 %v263_v44, %v263_v44 }
 0x251   :  { %2872 = vmatmul.mubr.msk.bf16.vlgmr.msra.gmra.mrb[4].mxu0 %vm239_vm2, %v268_v45 }
 0x252   :  { %2907 = vmatprep.mubr.msk.bf16.mxu0 %vm3345_vm3, %v3344_v34 }
 0x324   :  { %v325_v47 = vpop.f32.mrb[4].mxu0 }
 0x325   :  { %v326_v48 = vadd.f32 %v2673_v46, %v325_v47  ;;  %v2873_v49 = vpop.f32.mrb[5].mxu0 }
 0x326   :  { %v328_v50 = vpop.f32.mrb[6].mxu0 }
 0x327   :  { %v3561_v51 = vpack.c.bf16 %v326_v48, %v326_v48  ;;  %v2874_v52 = vpop.f32.mrb[7].mxu0 }
 0x329   :  { %400 = vrot.lane.b32.xlu0 %v3561_v51, %s3346_s0  ;;  %337 = vrot.lane.b32.xlu1 %v3561_v51, %s3347_s23 }
 0x39b   :  { %v338_v53 = vpop.permute.xlu1 %337  ;;  %v401_v55 = vpop.permute.xlu0 %400 }
 0x39c   :  { %v344_v54 = vsel %vm339_vm4, %v338_v53, 0  ;;  %v406_v56 = vsel %vm226_vm1, %v401_v55, 0 }
 0x39d   :  { %2876 = vmatpush3.bf16.xpose.msra.mxu1 %v344_v54 }
 0x39e   :  { %2881 = vmatprep.subr.bf16.mxu1 %v3344_v34 }
 0x3a4   :  { %2878 = vmatmul.mubr.msk.bf16.vlgmr.msra.gmra.mrb[0].mxu1 %vm339_vm4, %v3561_v51 }
 0x3a5   :  { %2882 = vmatpush3.bf16.msra.mxu1 %v406_v56  ;;  %2883 = vmatprep.mubr.msk.bf16.mxu1 %vm3345_vm3, %v3344_v34 }
 0x3a6   :  { %2887 = vmatprep.subr.bf16.mxu1 %v3344_v34 }
 0x477   :  { %v380_v62 = vpop.f32.mrb[0].mxu1 }
 0x478   :  { %v386_v1 = vmul.f32 0.35355338, %v380_v62  ;;  %v2879_v2 = vpop.f32.mrb[1].mxu1 }
 0x479   :  { %v383_v3 = vpop.f32.mrb[2].mxu1 }
 0x47a   :  { %v2880_v4 = vpop.f32.mrb[3].mxu1  ;;  %v387_v5 = vadd.f32 %v386_v1, %v3581_v0 }
 0x47c   :  { %v388_v6 = vsel %vm339_vm4, %v387_v5, -inf }
 0x47d   :  { %389 = vmax.xlane.f32.xlu1 %v388_v6 }
 0x50a   :  { %v390_v7 = vpop.xlane.xlu1 %389 }
 0x50b   :  { %v391_v8 = vsub.f32 %v387_v5, %v390_v7 }
 0x50d   :  { %v392_v9 = vmul.f32 1.442695, %v391_v8 }
 0x50f   :  { %3211 = vpow2.f32 %v392_v9 }
 0x519   :  { %v3212_v10 = vpop.eup %3211 }
 0x51a   :  { %v394_v11 = vsel %vm339_vm4, %v3212_v10, 0.0 }
 0x51b   :  { %395 = vadd.xlane.f32.xlu0 %v394_v11 }
 0x531   :  { %450 = vrot.lane.b32.xlu0 %v3561_v51, %s3349_s7 }
 0x535   :  { %448 = vrot.lane.b32.xlu0 %v3561_v51, %s3350_s1 }
 0x5a8   :  { %v396_v12 = vpop.xlane.xlu0 %395 }
 0x5a9   :  { %3213 = vrcp.f32 %v396_v12 }
 0x5ac   :  { %v451_v15 = vpop.permute.xlu0 %450 }
 0x5ad   :  { %v456_v17 = vsel %vm339_vm4, %v451_v15, 0 }
 0x5b0   :  { %v449_v18 = vpop.permute.xlu0 %448 }
 0x5b3   :  { %v3214_v13 = vpop.eup %3213 }
 0x5b4   :  { %v398_v14 = vmul.f32 %v3214_v13, %v3212_v10 }
 0x5b6   :  { %v399_v16 = vpack.c.bf16 %v398_v14, %v398_v14 }
 0x5b8   :  { %2884 = vmatmul.mubr.msk.bf16.vlgmr.msra.gmra.mrb[4].mxu1 %vm339_vm4, %v399_v16 }
 0x5b9   :  { %2888 = vmatpush3.bf16.xpose.msra.mxu1 %v456_v17  ;;  %2889 = vmatprep.mubr.msk.bf16.mxu1 %vm3345_vm3, %v3344_v34 }
 0x5ba   :  { %2893 = vmatprep.subr.bf16.mxu1 %v3344_v34 }
 0x5c0   :  { %2890 = vmatmul.mubr.msk.bf16.vlgmr.msra.gmra.mrb[8].mxu1 %vm339_vm4, %v449_v18 }
 0x5c1   :  { %2895 = vmatprep.mubr.msk.bf16.mxu1 %vm3345_vm3, %v3344_v34 }
 0x68b   :  { %v3598_v19 = vpop.f32.mrb[4].mxu1 }
 0x68c   :  { %v2885_v20 = vpop.f32.mrb[5].mxu1 }
 0x68d   :  { %v445_v21 = vpop.f32.mrb[6].mxu1 }
 0x68e   :  { %v2886_v22 = vpop.f32.mrb[7].mxu1 }
 0x693   :  { %v492_v23 = vpop.f32.mrb[8].mxu1 }
 0x694   :  { %v498_v24 = vmul.f32 0.35355338, %v492_v23  ;;  %v2891_v26 = vpop.f32.mrb[9].mxu1 }
 0x695   :  { %v495_v27 = vpop.f32.mrb[10].mxu1 }
 0x696   :  { %v2892_v28 = vpop.f32.mrb[11].mxu1  ;;  %v499_v29 = vadd.f32 %v498_v24, %v3581_v0 }
 0x698   :  { %v500_v30 = vsel %vm339_vm4, %v499_v29, -inf }
 0x699   :  { %501 = vmax.xlane.f32.xlu1 %v500_v30  ;;  %v3180_v30 = vld [vmem:[%s4136_s8 + $0x8] sm:$0xff]  }
 0x6aa   :  { %512 = vrot.lane.b32.xlu1 %v3561_v51, %s3351_s29 }
 0x6ae   :  { %562 = vrot.lane.b32.xlu1 %v3561_v51, %s3352_s2 }
 0x6b2   :  { %560 = vrot.lane.b32.xlu1 %v3561_v51, %s3353_s5 }
 0x6b6   :  { %674 = vrot.lane.b32.xlu1 %v3561_v51, %s3354_s24 }
 0x726   :  { %v502_v31 = vpop.xlane.xlu1 %501 }
 0x727   :  { %v503_v32 = vsub.f32 %v499_v29, %v502_v31  ;;  %v3179_v29 = vld [vmem:[%s4136_s8] sm:$0xff]  }
 0x729   :  { %v504_v33 = vmul.f32 1.442695, %v503_v32 }
 0x72a   :  { %v513_v35 = vpop.permute.xlu1 %512 }
 0x72b   :  { %3215 = vpow2.f32 %v504_v33  ;;  %v518_v36 = vsel %vm226_vm1, %v513_v35, 0 }
 0x72c   :  { %2894 = vmatpush3.bf16.msra.mxu1 %v518_v36 }
 0x72d   :  { %2899 = vmatprep.subr.bf16.mxu1 %v3344_v34 }
 0x72e   :  { %v563_v40 = vpop.permute.xlu1 %562 }
 0x72f   :  { %v568_v45 = vsel %vm339_vm4, %v563_v40, 0 }
 0x732   :  { %v561_v44 = vpop.permute.xlu1 %560 }
 0x735   :  { %v3216_v37 = vpop.eup %3215 }
 0x736   :  { %v506_v38 = vsel %vm339_vm4, %v3216_v37, 0.0  ;;  %v675_v46 = vpop.permute.xlu1 %674 }
 0x737   :  { %507 = vadd.xlane.f32.xlu0 %v506_v38  ;;  %v680_v47 = vsel %vm339_vm4, %v675_v46, 0 }
 0x74d   :  { %672 = vrot.lane.b32.xlu0 %v3561_v51, %s4161_s6  ;;  %s4163_s6 = smov 24  }
 0x7c4   :  { %v508_v39 = vpop.xlane.xlu0 %507 }
 0x7c5   :  { %3217 = vrcp.f32 %v508_v39 }
 0x7c8   :  { %v673_v48 = vpop.permute.xlu0 %672 }
 0x7cf   :  { %v3218_v41 = vpop.eup %3217 }
 0x7d0   :  { %v510_v42 = vmul.f32 %v3218_v41, %v3216_v37 }
 0x7d2   :  { %v511_v43 = vpack.c.bf16 %v510_v42, %v510_v42 }
 0x7d4   :  { %2896 = vmatmul.mubr.msk.bf16.vlgmr.msra.gmra.mrb[12].mxu1 %vm339_vm4, %v511_v43 }
 0x7d5   :  { %2900 = vmatpush3.bf16.xpose.msra.mxu1 %v568_v45  ;;  %2901 = vmatprep.mubr.msk.bf16.mxu1 %vm3345_vm3, %v3344_v34 }
 0x7d6   :  { %2911 = vmatprep.subr.bf16.mxu1 %v3344_v34 }
 0x7dc   :  { %2902 = vmatmul.mubr.msk.bf16.vlgmr.msra.gmra.mrb[16].mxu1 %vm339_vm4, %v561_v44 }
 0x7dd   :  { %2912 = vmatpush3.bf16.xpose.msra.mxu1 %v680_v47  ;;  %2913 = vmatprep.mubr.msk.bf16.mxu1 %vm3345_vm3, %v3344_v34 }
 0x7de   :  { %2923 = vmatprep.subr.bf16.mxu1 %v3344_v34 }
 0x7e4   :  { %2914 = vmatmul.mubr.msk.bf16.vlgmr.msra.gmra.mrb[20].mxu1 %vm339_vm4, %v673_v48  ;;  %v2688_v48 = vld [vmem:[%s4140_s12 + $0x1] ss:$0 sm:$0xff] }
 0x7e5   :  { %2927 = vmatprep.mubr.msk.bf16.mxu1 %vm3345_vm3, %v3344_v34  ;;  %2924 = vmatpush3.bf16.msra.mxu1 %v3179_v29 }
 0x7e6   :  { %2925 = vmatprep.subr.bf16.mxu1 %v3344_v34 }
 0x7e9   :  { %2926 = vmatpush3.bf16.msra.mxu1 %v3180_v30 }
 0x8a7   :  { %v554_v49 = vpop.f32.mrb[12].mxu1 }
 0x8a8   :  { %v2897_v50 = vpop.f32.mrb[13].mxu1 }
 0x8a9   :  { %v557_v52 = vpop.f32.mrb[14].mxu1 }
 0x8aa   :  { %v2898_v53 = vpop.f32.mrb[15].mxu1 }
 0x8af   :  { %v604_v54 = vpop.f32.mrb[16].mxu1 }
 0x8b0   :  { %v610_v55 = vmul.f32 0.35355338, %v604_v54  ;;  %v2903_v56 = vpop.f32.mrb[17].mxu1 }
 0x8b1   :  { %v607_v57 = vpop.f32.mrb[18].mxu1 }
 0x8b2   :  { %v2904_v60 = vpop.f32.mrb[19].mxu1  ;;  %v611_v61 = vadd.f32 %v610_v55, %v3581_v0 }
 0x8b4   :  { %v612_v62 = vsel %vm339_vm4, %v611_v61, -inf }
 0x8b5   :  { %613 = vmax.xlane.f32.xlu1 %v612_v62  ;;  %v3181_v62 = vld [vmem:[%s4137_s9] sm:$0xff]  }
 0x8b7   :  { %v716_v63 = vpop.f32.mrb[20].mxu1 }
 0x8b8   :  { %v722_v1 = vmul.f32 0.35355338, %v716_v63  ;;  %v2915_v2 = vpop.f32.mrb[21].mxu1 }
 0x8b9   :  { %v719_v3 = vpop.f32.mrb[22].mxu1 }
 0x8ba   :  { %v2916_v4 = vpop.f32.mrb[23].mxu1  ;;  %v723_v5 = vadd.f32 %v722_v1, %v3581_v0 }
 0x8bb   :  { %v2689_v4 = vld [vmem:[%s4176_s27 + $0x2] ss:$0 sm:$0xff] }
 0x8bc   :  { %v724_v6 = vsel %vm339_vm4, %v723_v5, -inf }
 0x8bd   :  { %725 = vmax.xlane.f32.xlu0 %v724_v6  ;;  %v2690_v6 = vld [vmem:[%s4176_s27 + $0x3] ss:$0 sm:$0xff] }
 0x8d3   :  { %736 = vrot.lane.b32.xlu0 %v3561_v51, %s4159_s25  ;;  %s3359_s25 = smov 16  }
 0x942   :  { %v614_v7 = vpop.xlane.xlu1 %613 }
 0x943   :  { %v615_v8 = vsub.f32 %v611_v61, %v614_v7 }
 0x945   :  { %v616_v9 = vmul.f32 1.442695, %v615_v8 }
 0x947   :  { %3219 = vpow2.f32 %v616_v9 }
 0x94a   :  { %v726_v10 = vpop.xlane.xlu0 %725 }
 0x94b   :  { %v727_v11 = vsub.f32 %v723_v5, %v726_v10  ;;  %v3183_v10 = vld [vmem:[%s4139_s11] sm:$0xff]  }
 0x94d   :  { %v728_v12 = vmul.f32 1.442695, %v727_v11  ;;  %v3184_v11 = vld [vmem:[%s4139_s11 + $0x8] sm:$0xff]  }
 0x94e   :  { %v737_v23 = vpop.permute.xlu0 %736 }
 0x94f   :  { %3221 = vpow2.f32 %v728_v12  ;;  %v742_v26 = vsel %vm226_vm1, %v737_v23, 0  ;;  %v3185_v12 = vld [vmem:[%s4139_s11 + $0x10] sm:$0xff]  }
 0x951   :  { %v3220_v13 = vpop.eup %3219 }
 0x952   :  { %v618_v14 = vsel %vm339_vm4, %v3220_v13, 0.0 }
 0x953   :  { %619 = vadd.xlane.f32.xlu1 %v618_v14  ;;  %v2691_v14 = vld [vmem:[%s4138_s10] ss:$0 sm:$0xff] }
 0x959   :  { %v3222_v0 = vpop.eup %3221 }
 0x95a   :  { %v730_v15 = vsel %vm339_vm4, %v3222_v0, 0.0 }
 0x95b   :  { %731 = vadd.xlane.f32.xlu1 %v730_v15 }
 0x96c   :  { %624 = vrot.lane.b32.xlu1 %v3561_v51, %s3357_s26 }
 0x970   :  { %785 = vrot.lane.b32.xlu1 %v554_v49, %s4157_s3 }
 0x9e0   :  { %v620_v16 = vpop.xlane.xlu1 %619 }
 0x9e1   :  { %3223 = vrcp.f32 %v620_v16 }
 0x9e8   :  { %v732_v17 = vpop.xlane.xlu1 %731 }
 0x9e9   :  { %3225 = vrcp.f32 %v732_v17 }
 0x9eb   :  { %v3224_v18 = vpop.eup %3223 }
 0x9ec   :  { %v622_v20 = vmul.f32 %v3224_v18, %v3220_v13  ;;  %v625_v21 = vpop.permute.xlu1 %624  ;;  %v3186_v13 = vld [vmem:[%s4139_s11 + $0x18] sm:$0xff]  }
 0x9ed   :  { %v630_v22 = vsel %vm226_vm1, %v625_v21, 0 }
 0x9ee   :  { %2906 = vmatpush3.bf16.msra.mxu0 %v630_v22  ;;  %v623_v24 = vpack.c.bf16 %v622_v20, %v622_v20 }
 0x9ef   :  { %2917 = vmatprep.subr.bf16.mxu0 %v3344_v34 }
 0x9f0   :  { %v786_v40 = vpop.permute.xlu1 %785 }
 0x9f1   :  { %2908 = vmatmul.mubr.msk.bf16.vlgmr.msra.gmra.mrb[8].mxu0 %vm339_vm4, %v623_v24  ;;  %v796_v42 = vsel %vm339_vm4, %v3598_v19, %v786_v40 }
 0x9f2   :  { %2918 = vmatpush3.bf16.msra.mxu0 %v742_v26  ;;  %2919 = vmatprep.mubr.msk.bf16.mxu0 %vm3345_vm3, %v3344_v34 }
 0x9f3   :  { %v3226_v51 = vpop.eup %3225  ;;  %2931 = vmatprep.subr.bf16.mxu0 %v3344_v34 }
 0x9f4   :  { %v734_v27 = vmul.f32 %v3226_v51, %v3222_v0 }
 0x9f6   :  { %v735_v28 = vpack.c.bf16 %v734_v27, %v734_v27 }
 0x9f9   :  { %2920 = vmatmul.mubr.msk.bf16.vlgmr.msra.gmra.mrb[12].mxu0 %vm339_vm4, %v735_v28 }
 0x9fa   :  { %2935 = vmatprep.mubr.msk.bf16.mxu0 %vm3345_vm3, %v3344_v34  ;;  %2932 = vmatpush3.bf16.msra.mxu0 %v3181_v62  ;;  %v3191_v62 = vld [vmem:[%s4143_s15 + $0x10] sm:$0xff]  }
 0x9fb   :  { %2933 = vmatprep.subr.bf16.mxu0 %v3344_v34 }
 0xac4   :  { %v666_v31 = vpop.f32.mrb[8].mxu0 }
 0xac5   :  { %789 = vrot.lane.b32.xlu1 %v666_v31, %s3359_s25  ;;  %v2909_v32 = vpop.f32.mrb[9].mxu0  ;;  %v2700_v31 = vld [vmem:[%s4140_s12 + $0x2] ss:$0 sm:$0xff] }
 0xac6   :  { %v669_v33 = vpop.f32.mrb[10].mxu0 }
 0xac7   :  { %v2910_v35 = vpop.f32.mrb[11].mxu0 }
 0xacc   :  { %v778_v36 = vpop.f32.mrb[12].mxu0 }
 0xacd   :  { %793 = vrot.lane.b32.xlu1 %v778_v36, %s4163_s6  ;;  %v2921_v37 = vpop.f32.mrb[13].mxu0 }
 0xace   :  { %v781_v38 = vpop.f32.mrb[14].mxu0 }
 0xacf   :  { %v2922_v39 = vpop.f32.mrb[15].mxu0 }
 0xad0   :  { %v1140_v39 = vld [vmem:[%s4177_s28] sm:$0xff] }
 0xb37   :  { %v790_v41 = vpop.permute.xlu1 %789 }
 0xb38   :  { %v798_v43 = vsel %vm797_vm6, %v796_v42, %v790_v41 }
 0xb3f   :  { %v794_v44 = vpop.permute.xlu1 %793 }
 0xb40   :  { %v800_v45 = vsel %vm799_vm7, %v798_v43, %v794_v44 }
 0xb41   :  { %v801_v46 = vpack.c.bf16 %v800_v45, %v800_v45  ;;  %v1141_v45 = vld [vmem:[%s4177_s28 + $0x8] sm:$0xff] }
 0xb43   :  { %2928 = vmatmul.mubr.msk.bf16.vlgmr.msra.gmra.mrb[24].mxu1 %vm239_vm2, %v801_v46  ;;  %v3187_v46 = vld [vmem:[%s4141_s13] sm:$0xff]  }
 0xc16   :  { %v851_v47 = vpop.f32.mrb[24].mxu1 }
 0xc17   :  { %v857_v49 = vadd.f32 %v851_v47, %v3529_v25  ;;  %v2929_v50 = vpop.f32.mrb[25].mxu1  ;;  %v3182_v25 = vld [vmem:[%s4137_s9 + $0x8] sm:$0xff]  }
 0xc18   :  { %v854_v52 = vpop.f32.mrb[26].mxu1  ;;  %2934 = vmatpush3.bf16.msra.mxu0 %v3182_v25  ;;  %v3188_v47 = vld [vmem:[%s4141_s13 + $0x8] sm:$0xff]   ;;  %v3192_v25 = vld [vmem:[%s4143_s15 + $0x18] sm:$0xff]  }
 0xc19   :  { %v863_v53 = vadd.f32 %v2688_v48, %v857_v49  ;;  %v2930_v54 = vpop.f32.mrb[27].mxu1  ;;  %2939 = vmatprep.subr.bf16.mxu0 %v3344_v34 }
 0xc1b   :  { %v866_v19 = vsel %vm239_vm2, %v863_v53, 0.0 }
 0xc1c   :  { %867 = vadd.xlane.f32.xlu1 %v866_v19  ;;  %v2702_v19 = vld [vmem:[%s4176_s27 + $0x5] ss:$0 sm:$0xff] }
 0xca9   :  { %v868_v55 = vpop.xlane.xlu1 %867 }
 0xcaa   :  { %v869_v56 = vmul.f32 0.03125, %v868_v55 }
 0xcac   :  { %v870_v57 = vsub.f32 %v863_v53, %v869_v56 }
 0xcae   :  { %v871_v60 = vmul.f32 %v870_v57, %v870_v57 }
 0xcb0   :  { %v872_v61 = vsel %vm239_vm2, %v871_v60, 0.0 }
 0xcb1   :  { %873 = vadd.xlane.f32.xlu0 %v872_v61  ;;  %v3190_v61 = vld [vmem:[%s4143_s15 + $0x8] sm:$0xff]  }
 0xd3e   :  { %v874_v63 = vpop.xlane.xlu0 %873 }
 0xd3f   :  { %v875_v1 = vmul.f32 0.03125, %v874_v63  ;;  %v3193_v63 = vld [vmem:[%s4143_s15 + $0x20] sm:$0xff]  }
 0xd41   :  { %v876_v2 = vadd.f32 1e-06, %v875_v1  ;;  %v3194_v1 = vld [vmem:[%s4143_s15 + $0x28] sm:$0xff]  }
 0xd43   :  { %3227 = vrsqrt.f32 %v876_v2  ;;  %v3195_v2 = vld [vmem:[%s4143_s15 + $0x30] sm:$0xff]  }
 0xd4d   :  { %v3228_v3 = vpop.eup %3227 }
 0xd4e   :  { %v878_v5 = vmul.f32 %v3228_v3, %v870_v57  ;;  %v3189_v57 = vld [vmem:[%s4143_s15] sm:$0xff]  }
 0xd50   :  { %v883_v7 = vmul.f32 %v2689_v4, %v878_v5  ;;  %v3196_v5 = vld [vmem:[%s4143_s15 + $0x38] sm:$0xff]  }
 0xd52   :  { %v888_v8 = vadd.f32 %v2690_v6, %v883_v7  ;;  %v3361_v6 = vmov 1.0|1.0  }
 0xd54   :  { %v893_v9 = vpack.c.bf16 %v888_v8, %v888_v8 }
 0xd56   :  { %2936 = vmatmul.mubr.msk.bf16.vlgmr.msra.gmra.mrb[16].mxu0 %vm239_vm2, %v893_v9 }
 0xd57   :  { %2947 = vmatprep.mubr.msk.bf16.mxu0 %vm3345_vm3, %v3344_v34  ;;  %2940 = vmatpush3.bf16.msra.mxu0 %v3183_v10 }
 0xd58   :  { %2941 = vmatprep.subr.bf16.mxu0 %v3344_v34 }
 0xd5b   :  { %2942 = vmatpush3.bf16.msra.mxu0 %v3184_v11  ;;  %v2703_v11 = vld [vmem:[%s4142_s14] ss:$0 sm:$0xff]  ;;  %s4182_s14 = smov 24  }
 0xd5c   :  { %2943 = vmatprep.subr.bf16.mxu0 %v3344_v34 }
 0xd5f   :  { %2944 = vmatpush3.bf16.msra.mxu0 %v3185_v12 }
 0xd60   :  { %2945 = vmatprep.subr.bf16.mxu0 %v3344_v34 }
 0xd63   :  { %2946 = vmatpush3.bf16.msra.mxu0 %v3186_v13 }
 0xd64   :  { %2951 = vmatprep.subr.bf16.mxu0 %v3344_v34 }
 0xe29   :  { %v950_v0 = vpop.f32.mrb[16].mxu0 }
 0xe2a   :  { %v951_v15 = vadd.f32 %v2691_v14, %v950_v0  ;;  %v2937_v16 = vpop.f32.mrb[17].mxu0 }
 0xe2b   :  { %v953_v17 = vpop.f32.mrb[18].mxu0 }
 0xe2c   :  { %v956_v18 = vmul.f32 %v951_v15, %v951_v15  ;;  %v2938_v20 = vpop.f32.mrb[19].mxu0 }
 0xe2e   :  { %v957_v21 = vmul.f32 %v956_v18, %v951_v15 }
 0xe30   :  { %v958_v22 = vmul.f32 0.044715, %v957_v21 }
 0xe32   :  { %v959_v23 = vadd.f32 %v958_v22, %v951_v15 }
 0xe34   :  { %v960_v24 = vmul.f32 0.7978846, %v959_v23 }
 0xe36   :  { %3229 = vtanh.f32 %v960_v24 }
 0xe40   :  { %v3230_v26 = vpop.eup %3229 }
 0xe41   :  { %v962_v51 = vadd.f32 1.0, %v3230_v26 }
 0xe43   :  { %v963_v27 = vmul.f32 0.5, %v962_v51 }
 0xe45   :  { %v964_v28 = vmul.f32 %v963_v27, %v951_v15 }
 0xe47   :  { %v973_v29 = vpack.c.bf16 %v964_v28, %v964_v28 }
 0xe49   :  { %2948 = vmatmul.mubr.msk.bf16.vlgmr.msra.gmra.mrb[20].mxu0 %vm178_vm0, %v973_v29 }
 0xe4a   :  { %2955 = vmatprep.mubr.msk.bf16.mxu0 %vm3345_vm3, %v3344_v34  ;;  %2952 = vmatpush3.bf16.msra.mxu0 %v3187_v46 }
 0xe4b   :  { %2953 = vmatprep.subr.bf16.mxu0 %v3344_v34 }
 0xe4e   :  { %2954 = vmatpush3.bf16.msra.mxu0 %v3188_v47  ;;  %v2719_v47 = vld [vmem:[%s4144_s16] ss:$0 sm:$0xff] }
 0xe4f   :  { %2959 = vmatprep.subr.bf16.mxu0 %v3344_v34 }
 0xf1c   :  { %v1035_v30 = vpop.f32.mrb[20].mxu0 }
 0xf1d   :  { %v1041_v32 = vadd.f32 %v1035_v30, %v863_v53  ;;  %v2949_v33 = vpop.f32.mrb[21].mxu0  ;;  %v2701_v53 = vld [vmem:[%s4176_s27 + $0x4] ss:$0 sm:$0xff] }
 0xf1e   :  { %v1038_v35 = vpop.f32.mrb[22].mxu0 }
 0xf1f   :  { %v2950_v36 = vpop.f32.mrb[23].mxu0  ;;  %v1047_v37 = vadd.f32 %v2700_v31, %v1041_v32 }
 0xf21   :  { %v1050_v38 = vsel %vm239_vm2, %v1047_v37, 0.0 }
 0xf22   :  { %1051 = vadd.xlane.f32.xlu0 %v1050_v38 }
 0xf38   :  { %1143 = vperm.xlu0 %3148, %v1140_v39  }
 0xfaf   :  { %v1052_v40 = vpop.xlane.xlu0 %1051 }
 0xfb0   :  { %v1053_v41 = vmul.f32 0.03125, %v1052_v40 }
 0xfb2   :  { %v1054_v42 = vsub.f32 %v1047_v37, %v1053_v41 }
 0xfb4   :  { %v1055_v43 = vmul.f32 %v1054_v42, %v1054_v42 }
 0xfb6   :  { %v1056_v44 = vsel %vm239_vm2, %v1055_v43, 0.0 }
 0xfb7   :  { %1057 = vadd.xlane.f32.xlu1 %v1056_v44  ;;  %v1144_v4 = vpop.permute.xlu0 %1143 }
 0xfb8   :  { %vm1148_vm9 = vcmp.eq.s32.totalorder %v3577_v59, %v1144_v4 }
 0xfc8   :  { %1146 = vperm.xlu1 %3149, %v1141_v45  }
0x1044   :  { %v1058_v48 = vpop.xlane.xlu1 %1057 }
0x1045   :  { %v1059_v49 = vmul.f32 0.03125, %v1058_v48 }
0x1047   :  { %v1060_v50 = vadd.f32 1e-06, %v1059_v49  ;;  %v2720_v49 = vld [vmem:[%s4144_s16 + $0x1] ss:$0 sm:$0xff] }
0x1048   :  { %v1147_v3 = vpop.permute.xlu1 %1146 }
0x1049   :  { %3231 = vrsqrt.f32 %v1060_v50  ;;  %vm1149_vm8 = vcmp.eq.s32.totalorder %v3577_v59, %v1147_v3 }
0x104a   :  { %vm2717_vm10 = vmpackc.low %vm1149_vm8, %vm1148_vm9 }
0x1053   :  { %v3232_v52 = vpop.eup %3231 }
0x1054   :  { %v1062_v54 = vmul.f32 %v3232_v52, %v1054_v42 }
0x1056   :  { %v1067_v55 = vmul.f32 %v2701_v53, %v1062_v54 }
0x1058   :  { %v1072_v56 = vadd.f32 %v2702_v19, %v1067_v55 }
0x105a   :  { %v1077_v60 = vpack.c.bf16 %v1072_v56, %v1072_v56 }
0x105c   :  { %2956 = vmatmul.mubr.msk.bf16.vlgmr.msra.gmra.mrb[24].mxu0 %vm239_vm2, %v1077_v60 }
0x105d   :  { %2960 = vmatpush3.bf16.msra.mxu0 %v3189_v57  ;;  %2975 = vmatprep.mubr.msk.bf16.mxu0 %vm3345_vm3, %v3344_v34 }
0x105e   :  { %2961 = vmatprep.subr.bf16.mxu0 %v3344_v34 }
0x1061   :  { %2962 = vmatpush3.bf16.msra.mxu0 %v3190_v61 }
0x1062   :  { %2963 = vmatprep.subr.bf16.mxu0 %v3344_v34 }
0x1065   :  { %2964 = vmatpush3.bf16.msra.mxu0 %v3191_v62 }
0x1066   :  { %2965 = vmatprep.subr.bf16.mxu0 %v3344_v34 }
0x1069   :  { %2966 = vmatpush3.bf16.msra.mxu0 %v3192_v25 }
0x106a   :  { %2967 = vmatprep.subr.bf16.mxu0 %v3344_v34 }
0x106d   :  { %2968 = vmatpush3.bf16.msra.mxu0 %v3193_v63 }
0x106e   :  { %2969 = vmatprep.subr.bf16.mxu0 %v3344_v34 }
0x1071   :  { %2970 = vmatpush3.bf16.msra.mxu0 %v3194_v1 }
0x1072   :  { %2971 = vmatprep.subr.bf16.mxu0 %v3344_v34 }
0x1075   :  { %2972 = vmatpush3.bf16.msra.mxu0 %v3195_v2 }
0x1076   :  { %2973 = vmatprep.subr.bf16.mxu0 %v3344_v34 }
0x1079   :  { %2974 = vmatpush3.bf16.msra.mxu0 %v3196_v5 }
0x107c   :  { %2976 = vmatmul.mubr.msk.bf16.vlgmr.msra.gmra.mrb[28].mxu0 %vm2717_vm10, %v3361_v6 }
0x112f   :  { %v1134_v7 = vpop.f32.mrb[24].mxu0 }
0x1130   :  { %v2957_v8 = vpop.f32.mrb[25].mxu0  ;;  %v1135_v13 = vadd.f32 %v2703_v11, %v1134_v7  ;;  %v3197_v7 = vld [vmem:[%s4145_s17] sm:$0xff]  }
0x1131   :  { %v1137_v9 = vpop.f32.mrb[26].mxu0  ;;  %2979 = vmatprep.subr.bf16.mxu1 %v3197_v7  ;;  %v3198_v8 = vld [vmem:[%s4145_s17 + $0x8] sm:$0xff]  }
0x1132   :  { %v2958_v10 = vpop.f32.mrb[27].mxu0  ;;  %2980 = vmatpush3.bf16.msra.mxu1 %v3197_v7 }
0x1133   :  { %2981 = vmatprep.subr.bf16.mxu1 %v3198_v8 }
0x1136   :  { %2982 = vmatpush3.bf16.msra.mxu1 %v3198_v8 }
0x114f   :  { %v1253_v12 = vpop.f32.mrb[28].mxu0 }
0x1150   :  { %v1261_v14 = vrot.slane %v1253_v12, 4  ;;  %v2977_v34 = vpop.f32.mrb[29].mxu0 }
0x1151   :  { %v1256_v0 = vpop.f32.mrb[30].mxu0 }
0x1152   :  { %v1264_v15 = vsel %vm226_vm1, %v1261_v14, %v1135_v13  ;;  %v1263_v59 = vsel %vm226_vm1, %v1135_v13, %v1261_v14  ;;  %v2978_v16 = vpop.f32.mrb[31].mxu0  ;;  %v1273_v20 = vsel %vm239_vm2, %v1256_v0, 0.0 }
0x1153   :  { %v1270_v17 = vsel %vm239_vm2, %v1264_v15, 0.0  ;;  %v1267_v18 = vsel %vm239_vm2, %v1263_v59, 0.0  ;;  %v3811_v16 = vsub.s32 0, %v3575_v58 }
0x1154   :  { %1271 = vadd.xlane.f32.xlu0 %v1270_v17  ;;  %1268 = vadd.xlane.f32.xlu1 %v1267_v18 }
0x1158   :  { %1274 = vadd.xlane.f32.xlu1 %v1273_v20 }
0x11e1   :  { %v1272_v21 = vpop.xlane.xlu0 %1271  ;;  %v1269_v22 = vpop.xlane.xlu1 %1268 }
0x11e2   :  { %v1277_v23 = vmul.f32 0.03125, %v1272_v21  ;;  %v1276_v24 = vmul.f32 0.03125, %v1269_v22 }
0x11e4   :  { %v1280_v26 = vsub.f32 %v1264_v15, %v1277_v23  ;;  %v1279_v51 = vsub.f32 %v1263_v59, %v1276_v24  ;;  %v1326_v59 = vld [vmem:[%s4144_s16 + $0x2] sm:$0x1] }
0x11e5   :  { %v1275_v27 = vpop.xlane.xlu1 %1274  ;;  %v1351_v17 = vadd.f32 1.0, %v1326_v59 }
0x11e6   :  { %v1278_v28 = vmul.f32 0.03125, %v1275_v27  ;;  %v1282_v29 = vmul.f32 %v1279_v51, %v1279_v51  ;;  %v1283_v32 = vmul.f32 %v1280_v26, %v1280_v26 }
0x11e7   :  { %v1355_v21 = vrot.slane %v1351_v17, %v3811_v16 }
0x11e8   :  { %v1281_v30 = vsub.f32 %v1256_v0, %v1278_v28  ;;  %v1285_v31 = vsel %vm239_vm2, %v1282_v29, 0.0  ;;  %v1288_v33 = vsel %vm239_vm2, %v1283_v32, 0.0 }
0x11e9   :  { %1286 = vadd.xlane.f32.xlu1 %v1285_v31 }
0x11ea   :  { %v1284_v35 = vmul.f32 %v1281_v30, %v1281_v30 }
0x11ec   :  { %v1291_v36 = vsel %vm239_vm2, %v1284_v35, 0.0 }
0x11ed   :  { %1289 = vadd.xlane.f32.xlu1 %v1288_v33 }
0x11f1   :  { %1292 = vadd.xlane.f32.xlu1 %v1291_v36 }
0x1276   :  { %v1287_v37 = vpop.xlane.xlu1 %1286 }
0x1277   :  { %v1294_v38 = vmul.f32 0.03125, %v1287_v37 }
0x1279   :  { %v1297_v39 = vadd.f32 1e-05, %v1294_v38 }
0x127a   :  { %v1290_v40 = vpop.xlane.xlu1 %1289 }
0x127b   :  { %3233 = vrsqrt.f32 %v1297_v39  ;;  %v1295_v41 = vmul.f32 0.03125, %v1290_v40 }
0x127d   :  { %v1298_v42 = vadd.f32 1e-05, %v1295_v41 }
0x127e   :  { %v1293_v43 = vpop.xlane.xlu1 %1292 }
0x127f   :  { %3235 = vrsqrt.f32 %v1298_v42  ;;  %v1296_v44 = vmul.f32 0.03125, %v1293_v43 }
0x1281   :  { %v1299_v45 = vadd.f32 1e-05, %v1296_v44 }
0x1283   :  { %3237 = vrsqrt.f32 %v1299_v45 }
0x1285   :  { %v3234_v46 = vpop.eup %3233 }
0x1286   :  { %v1303_v48 = vmul.f32 %v3234_v46, %v1279_v51 }
0x1288   :  { %v1310_v50 = vmul.f32 %v2719_v47, %v1303_v48 }
0x1289   :  { %v3236_v52 = vpop.eup %3235 }
0x128a   :  { %v1317_v53 = vadd.f32 %v2720_v49, %v1310_v50  ;;  %v1304_v54 = vmul.f32 %v3236_v52, %v1280_v26 }
0x128c   :  { %v3786_v19 = vmul.f32 5.656854, %v1317_v53  ;;  %v1311_v55 = vmul.f32 %v2719_v47, %v1304_v54 }
0x128d   :  { %v3238_v56 = vpop.eup %3237 }
0x128e   :  { %v1327_v57 = vmul.f32 %v3786_v19, %v3786_v19  ;;  %v1318_v60 = vadd.f32 %v2720_v49, %v1311_v55  ;;  %v1305_v61 = vmul.f32 %v3238_v56, %v1281_v30 }
0x1290   :  { %v1330_v62 = vsel %vm239_vm2, %v1327_v57, 0.0  ;;  %v3791_v25 = vmul.f32 5.656854, %v1318_v60  ;;  %v1312_v63 = vmul.f32 %v2719_v47, %v1305_v61 }
0x1291   :  { %1331 = vadd.xlane.f32.xlu1 %v1330_v62 }
0x1292   :  { %v1328_v1 = vmul.f32 %v3791_v25, %v3791_v25  ;;  %v1319_v2 = vadd.f32 %v2720_v49, %v1312_v63 }
0x1294   :  { %v1333_v3 = vsel %vm239_vm2, %v1328_v1, 0.0  ;;  %v3796_v4 = vmul.f32 5.656854, %v1319_v2 }
0x1295   :  { %1334 = vadd.xlane.f32.xlu0 %v1333_v3 }
0x1296   :  { %v1329_v5 = vmul.f32 %v3796_v4, %v3796_v4 }
0x1298   :  { %v1336_v6 = vsel %vm239_vm2, %v1329_v5, 0.0 }
0x1299   :  { %1337 = vadd.xlane.f32.xlu1 %v1336_v6 }
0x131e   :  { %v1332_v9 = vpop.xlane.xlu1 %1331 }
0x131f   :  { %v1339_v10 = vmul.f32 0.03125, %v1332_v9 }
0x1321   :  { %v1342_v11 = vadd.f32 1e-06, %v1339_v10 }
0x1322   :  { %v1335_v12 = vpop.xlane.xlu0 %1334 }
0x1323   :  { %3239 = vrsqrt.f32 %v1342_v11  ;;  %v1340_v13 = vmul.f32 0.03125, %v1335_v12 }
0x1325   :  { %v1343_v14 = vadd.f32 1e-06, %v1340_v13 }
0x1326   :  { %v1338_v34 = vpop.xlane.xlu1 %1337 }
0x1327   :  { %3241 = vrsqrt.f32 %v1343_v14  ;;  %v1341_v0 = vmul.f32 0.03125, %v1338_v34 }
0x1329   :  { %v1344_v15 = vadd.f32 1e-06, %v1341_v0 }
0x132b   :  { %3243 = vrsqrt.f32 %v1344_v15 }
0x132d   :  { %v3240_v18 = vpop.eup %3239 }
0x132e   :  { %v1348_v20 = vmul.f32 %v3240_v18, %v3786_v19 }
0x1330   :  { %v1356_v24 = vmul.f32 %v1355_v21, %v1348_v20 }
0x1331   :  { %v3242_v22 = vpop.eup %3241 }
0x1332   :  { %v1349_v23 = vmul.f32 %v3242_v22, %v3791_v25 }
0x1334   :  { %v1357_v26 = vmul.f32 %v1355_v21, %v1349_v23 }
0x1335   :  { %v3244_v51 = vpop.eup %3243 }
0x1336   :  { %v1350_v27 = vmul.f32 %v3244_v51, %v3796_v4  ;;  %v1363_v28 = vpack.c.bf16 %v1357_v26, %v1356_v24 }
0x1338   :  { %2983 = vmatprep.mubr.msk.bf16.mxu1 %vm239_vm2, %v1363_v28  ;;  %v1358_v29 = vmul.f32 %v1355_v21, %v1350_v27 }
0x133a   :  { %v1364_v58 = vpack.c.bf16 %v1358_v29, %v1358_v29 }
0x133c   :  { %2984 = vmatmul.mubr.msk.bf16.vlgmr.msra.gmra.mrb[28].mxu1 %vm239_vm2, %v1364_v58 }
0x140f   :  { %v2985_v30 = vpop.f32.mrb[28].mxu1 }
0x1410   :  { %v3819_v31 = vpack.c.bf16 %v2985_v30, %v2985_v30  ;;  %v1417_v32 = vpop.f32.mrb[29].mxu1 }
0x1411   :  { %v2986_v33 = vpop.f32.mrb[30].mxu1 }
0x1412   :  { %1441 = vrot.lane.b32.xlu1 %v3819_v31, %s3347_s23  ;;  %v1420_v35 = vpop.f32.mrb[31].mxu1 }
0x1413   :  { %v3823_v36 = vpack.c.bf16 %v1420_v35, %v1417_v32 }
0x1415   :  { %1439 = vrot.lane.b32.xlu0 %v3823_v36, %s3347_s23  ;;  %2991 = vmatprep.mubr.msk.bf16.mxu1 %vm339_vm4, %v3823_v36 }
0x1416   :  { %1610 = vrot.lane.b32.xlu1 %v3823_v36, %s3349_s7 }
0x1419   :  { %1612 = vrot.lane.b32.xlu0 %v3819_v31, %s3349_s7  ;;  %s4178_s7 = sld [smem:[#allocation7_spill]] }
0x141a   :  { %1606 = vrot.lane.b32.xlu1 %v3823_v36, %s3350_s1 }
0x141d   :  { %1608 = vrot.lane.b32.xlu0 %v3819_v31, %s3350_s1 }
0x141f   :  { %v3852_v50 = vld [vmem:[%s4178_s7] sm:$0xff]  ;;  %v3857_v60 = vld [vmem:[%s4178_s7 + $0x8] sm:$0xff]  ;;  %v3863_v2 = vld [vmem:[%s4178_s7 + $0x10] sm:$0xff] }
0x1484   :  { %v1442_v37 = vpop.permute.xlu1 %1441 }
0x1485   :  { %v1453_v44 = vsel %vm339_vm4, %v1442_v37, 0 }
0x1487   :  { %v1440_v38 = vpop.permute.xlu0 %1439 }
0x1488   :  { %v1450_v39 = vsel %vm339_vm4, %v1440_v38, 0  ;;  %v1611_v40 = vpop.permute.xlu1 %1610  ;;  %3107 = vmatprep.subr.msk.bf16.mxu1 %vm339_vm4, %v1440_v38 }
0x1489   :  { %v1621_v41 = vsel %vm339_vm4, %v1611_v40, 0  ;;  %2988 = vmatpush3.bf16.xpose.msra.mxu1 %v1450_v39  ;;  %3110 = vmatprep.subr.msk.bf16.mxu0 %vm339_vm4, %v1611_v40 }
0x148a   :  { %3108 = vmatprep.subr.msk.bf16.mxu1 %vm339_vm4, %v1442_v37  ;;  %3004 = vmatpush3.bf16.xpose.msra.mxu0 %v1621_v41 }
0x148b   :  { %v1613_v42 = vpop.permute.xlu0 %1612 }
0x148c   :  { %v1607_v43 = vpop.permute.xlu1 %1606  ;;  %3111 = vmatprep.subr.msk.bf16.mxu0 %vm339_vm4, %v1613_v42  ;;  %v1624_v45 = vsel %vm339_vm4, %v1613_v42, 0 }
0x148d   :  { %3007 = vmatprep.mubr.msk.bf16.mxu0 %vm339_vm4, %v1607_v43 }
0x148f   :  { %v1609_v46 = vpop.permute.xlu0 %1608 }
0x1491   :  { %2990 = vmatpush3.bf16.xpose.msra.mxu1 %v1453_v44 }
0x1492   :  { %3006 = vmatpush3.bf16.xpose.msra.mxu0 %v1624_v45 }
0x1498   :  { %2992 = vmatmul.mubr.msk.bf16.vlgmr.msra.gmra.mrb[32].mxu1 %vm339_vm4, %v3819_v31 }
0x1499   :  { %3008 = vmatmul.mubr.msk.bf16.vlgmr.msra.gmra.mrb[32].mxu0 %vm339_vm4, %v1609_v46 }
0x156b   :  { %v2993_v47 = vpop.f32.mrb[32].mxu1 }
0x156c   :  { %v1489_v48 = vpop.f32.mrb[33].mxu1  ;;  %v3009_v49 = vpop.f32.mrb[32].mxu0  ;;  %v1505_v61 = vmul.f32 0.35355338, %v2993_v47 }
0x156d   :  { %v1503_v52 = vmul.f32 0.35355338, %v1489_v48  ;;  %v2994_v53 = vpop.f32.mrb[34].mxu1  ;;  %v1660_v54 = vpop.f32.mrb[33].mxu0  ;;  %v1676_v3 = vmul.f32 0.35355338, %v3009_v49 }
0x156e   :  { %v1674_v55 = vmul.f32 0.35355338, %v1660_v54  ;;  %v1492_v56 = vpop.f32.mrb[35].mxu1  ;;  %v3010_v57 = vpop.f32.mrb[34].mxu0  ;;  %v1508_v10 = vadd.f32 %v1505_v61, %v3863_v2 }
0x156f   :  { %v1504_v62 = vmul.f32 0.35355338, %v1492_v56  ;;  %v1663_v63 = vpop.f32.mrb[35].mxu0  ;;  %v1506_v1 = vadd.f32 %v1503_v52, %v3852_v50  ;;  %v1679_v12 = vadd.f32 %v1676_v3, %v3863_v2 }
0x1570   :  { %v1677_v7 = vadd.f32 %v1674_v55, %v3852_v50  ;;  %v1675_v8 = vmul.f32 0.35355338, %v1663_v63  ;;  %v1515_v13 = vsel %vm799_vm7, %v1508_v10, -inf }
0x1571   :  { %v1509_v5 = vsel %vm799_vm7, %v1506_v1, -inf  ;;  %v1507_v6 = vadd.f32 %v1504_v62, %v3857_v60  ;;  %v1686_v34 = vsel %vm799_vm7, %v1679_v12, -inf }
0x1572   :  { %1510 = vmax.xlane.f32.xlu1 %v1509_v5  ;;  %v1680_v11 = vsel %vm799_vm7, %v1677_v7, -inf  ;;  %v1678_v14 = vadd.f32 %v1675_v8, %v3857_v60 }
0x1573   :  { %v1512_v9 = vsel %vm799_vm7, %v1507_v6, -inf }
0x1574   :  { %1513 = vmax.xlane.f32.xlu0 %v1512_v9  ;;  %v1683_v0 = vsel %vm799_vm7, %v1678_v14, -inf }
0x1576   :  { %1681 = vmax.xlane.f32.xlu1 %v1680_v11 }
0x1578   :  { %1516 = vmax.xlane.f32.xlu0 %v1515_v13 }
0x157a   :  { %1687 = vmax.xlane.f32.xlu1 %v1686_v34 }
0x157c   :  { %1684 = vmax.xlane.f32.xlu0 %v1683_v0 }
0x158b   :  { %1546 = vrot.lane.b32.xlu1 %v3819_v31, %s3346_s0 }
0x1592   :  { %1544 = vrot.lane.b32.xlu0 %v3823_v36, %s3346_s0  ;;  %s4179_s0 = smov 104  }
0x15ff   :  { %v1511_v15 = vpop.xlane.xlu1 %1510 }
0x1600   :  { %v1518_v17 = vsub.f32 %v1506_v1, %v1511_v15 }
0x1601   :  { %v1514_v59 = vpop.xlane.xlu0 %1513 }
0x1602   :  { %v1521_v23 = vmul.f32 1.442695, %v1518_v17  ;;  %v1519_v27 = vsub.f32 %v1507_v6, %v1514_v59 }
0x1603   :  { %v1682_v18 = vpop.xlane.xlu1 %1681 }
0x1604   :  { %v1689_v21 = vsub.f32 %v1677_v7, %v1682_v18  ;;  %v1523_v35 = vmul.f32 1.442695, %v1519_v27 }
0x1605   :  { %v1517_v20 = vpop.xlane.xlu0 %1516 }
0x1606   :  { %v1520_v22 = vsub.f32 %v1508_v10, %v1517_v20  ;;  %v1692_v29 = vmul.f32 1.442695, %v1689_v21 }
0x1607   :  { %v1688_v24 = vpop.xlane.xlu1 %1687 }
0x1608   :  { %v1525_v26 = vmul.f32 1.442695, %v1520_v22  ;;  %v1691_v51 = vsub.f32 %v1679_v12, %v1688_v24 }
0x1609   :  { %v1685_v28 = vpop.xlane.xlu0 %1684 }
0x160a   :  { %3245 = vpow2.f32 %v1525_v26  ;;  %v1696_v58 = vmul.f32 1.442695, %v1691_v51  ;;  %v1690_v30 = vsub.f32 %v1678_v14, %v1685_v28 }
0x160b   :  { %3247 = vpow2.f32 %v1521_v23  ;;  %v1547_v37 = vpop.permute.xlu1 %1546 }
0x160c   :  { %3249 = vpow2.f32 %v1696_v58  ;;  %v1694_v32 = vmul.f32 1.442695, %v1690_v30  ;;  %v1556_v38 = vsel %vm226_vm1, %v1547_v37, 0 }
0x160d   :  { %v1545_v33 = vpop.permute.xlu0 %1544  ;;  %3251 = vpow2.f32 %v1692_v29 }
0x160e   :  { %2995 = vmatprep.subr.bf16.mxu1 %v1545_v33  ;;  %3253 = vpow2.f32 %v1694_v32 }
0x160f   :  { %2996 = vmatpush3.bf16.msra.mxu1 %v1545_v33  ;;  %3255 = vpow2.f32 %v1523_v35 }
0x1610   :  { %3109 = vmatprep.subr.msk.bf16.mxu1 %vm226_vm1, %v1547_v37 }
0x1613   :  { %2998 = vmatpush3.bf16.msra.mxu1 %v1556_v38 }
0x1614   :  { %v3246_v39 = vpop.eup %3245 }
0x1615   :  { %v3248_v40 = vpop.eup %3247  ;;  %v1533_v41 = vsel %vm799_vm7, %v3246_v39, 0.0 }
0x1616   :  { %v3250_v42 = vpop.eup %3249  ;;  %1534 = vadd.xlane.f32.xlu0 %v1533_v41  ;;  %v1527_v45 = vsel %vm799_vm7, %v3248_v40, 0.0 }
0x1617   :  { %v1704_v43 = vsel %vm799_vm7, %v3250_v42, 0.0  ;;  %v3252_v44 = vpop.eup %3251 }
0x1618   :  { %1705 = vadd.xlane.f32.xlu1 %v1704_v43  ;;  %v3254_v46 = vpop.eup %3253  ;;  %v1698_v47 = vsel %vm799_vm7, %v3252_v44, 0.0 }
0x1619   :  { %v3256_v48 = vpop.eup %3255  ;;  %v1701_v49 = vsel %vm799_vm7, %v3254_v46, 0.0 }
0x161a   :  { %1528 = vadd.xlane.f32.xlu0 %v1527_v45  ;;  %v1530_v52 = vsel %vm799_vm7, %v3256_v48, 0.0 }
0x161c   :  { %1699 = vadd.xlane.f32.xlu1 %v1698_v47 }
0x161e   :  { %1702 = vadd.xlane.f32.xlu0 %v1701_v49 }
0x1620   :  { %1531 = vadd.xlane.f32.xlu1 %v1530_v52 }
0x1631   :  { %1715 = vrot.lane.b32.xlu1 %v3823_v36, %s3351_s29 }
0x1634   :  { %1717 = vrot.lane.b32.xlu0 %v3819_v31, %s3351_s29  ;;  %s4180_s29 = smov 40  }
0x1635   :  { %1781 = vrot.lane.b32.xlu1 %v3823_v36, %s3352_s2 }
0x1638   :  { %1783 = vrot.lane.b32.xlu0 %v3819_v31, %s3352_s2  ;;  %s4181_s2 = smov 8  }
0x1639   :  { %1777 = vrot.lane.b32.xlu1 %v3823_v36, %s3353_s5 }
0x163c   :  { %1779 = vrot.lane.b32.xlu0 %v3819_v31, %s3353_s5 }
0x16a3   :  { %v1535_v53 = vpop.xlane.xlu0 %1534 }
0x16a4   :  { %3257 = vrcp.f32 %v1535_v53 }
0x16a5   :  { %v1706_v54 = vpop.xlane.xlu1 %1705 }
0x16a7   :  { %v1529_v55 = vpop.xlane.xlu0 %1528 }
0x16a8   :  { %3259 = vrcp.f32 %v1529_v55 }
0x16a9   :  { %v1700_v56 = vpop.xlane.xlu1 %1699 }
0x16ab   :  { %v1703_v57 = vpop.xlane.xlu0 %1702 }
0x16ac   :  { %3261 = vrcp.f32 %v1703_v57 }
0x16ad   :  { %3263 = vrcp.f32 %v1700_v56  ;;  %v1532_v61 = vpop.xlane.xlu1 %1531 }
0x16ae   :  { %3265 = vrcp.f32 %v1532_v61  ;;  %v3258_v63 = vpop.eup %3257 }
0x16af   :  { %3267 = vrcp.f32 %v1706_v54  ;;  %v1541_v7 = vmul.f32 %v3258_v63, %v3246_v39  ;;  %v1718_v0 = vpop.permute.xlu0 %1717 }
0x16b0   :  { %v1727_v17 = vsel %vm226_vm1, %v1718_v0, 0 }
0x16b1   :  { %v1716_v62 = vpop.permute.xlu1 %1715  ;;  %v1543_v13 = vpack.c.bf16 %v1541_v7, %v1541_v7 }
0x16b2   :  { %3011 = vmatprep.subr.bf16.mxu1 %v1716_v62  ;;  %v3260_v1 = vpop.eup %3259 }
0x16b3   :  { %v1539_v8 = vmul.f32 %v3260_v1, %v3248_v40  ;;  %v1784_v22 = vpop.permute.xlu0 %1783 }
0x16b4   :  { %v1795_v23 = vsel %vm339_vm4, %v1784_v22, 0 }
0x16b5   :  { %v1782_v59 = vpop.permute.xlu1 %1781 }
0x16b6   :  { %v3262_v3 = vpop.eup %3261  ;;  %v1792_v21 = vsel %vm339_vm4, %v1782_v59, 0 }
0x16b7   :  { %v3264_v5 = vpop.eup %3263  ;;  %v1711_v10 = vmul.f32 %v3262_v3, %v3254_v46  ;;  %v1780_v24 = vpop.permute.xlu0 %1779 }
0x16b8   :  { %v3266_v6 = vpop.eup %3265  ;;  %v1710_v12 = vmul.f32 %v3264_v5, %v3252_v44 }
0x16b9   :  { %v1540_v9 = vmul.f32 %v3266_v6, %v3256_v48  ;;  %v3268_v14 = vpop.eup %3267  ;;  %v1778_v20 = vpop.permute.xlu1 %1777 }
0x16ba   :  { %v1713_v34 = vpack.c.bf16 %v1711_v10, %v1710_v12  ;;  %v1712_v15 = vmul.f32 %v3268_v14, %v3250_v42 }
0x16bb   :  { %v1542_v11 = vpack.c.bf16 %v1540_v9, %v1539_v8 }
0x16bc   :  { %v1714_v18 = vpack.c.bf16 %v1712_v15, %v1712_v15 }
0x16bd   :  { %2999 = vmatprep.mubr.msk.bf16.mxu1 %vm799_vm7, %v1542_v11 }
0x16be   :  { %3000 = vmatmul.mubr.msk.bf16.vlgmr.msra.gmra.mrb[36].mxu1 %vm799_vm7, %v1543_v13 }
0x16bf   :  { %3012 = vmatpush3.bf16.msra.mxu1 %v1716_v62  ;;  %3015 = vmatprep.mubr.msk.bf16.mxu1 %vm799_vm7, %v1713_v34 }
0x16c0   :  { %3112 = vmatprep.subr.msk.bf16.mxu1 %vm226_vm1, %v1718_v0 }
0x16c3   :  { %3014 = vmatpush3.bf16.msra.mxu1 %v1727_v17 }
0x16c4   :  { %3113 = vmatprep.subr.msk.bf16.mxu1 %vm339_vm4, %v1782_v59 }
0x16c6   :  { %3016 = vmatmul.mubr.msk.bf16.vlgmr.msra.gmra.mrb[40].mxu1 %vm799_vm7, %v1714_v18 }
0x16c7   :  { %3023 = vmatprep.mubr.msk.bf16.mxu1 %vm339_vm4, %v1778_v20 }
0x16cc   :  { %3020 = vmatpush3.bf16.xpose.msra.mxu1 %v1792_v21 }
0x16cd   :  { %3114 = vmatprep.subr.msk.bf16.mxu1 %vm339_vm4, %v1784_v22 }
0x16d4   :  { %3022 = vmatpush3.bf16.xpose.msra.mxu1 %v1795_v23 }
0x16db   :  { %3024 = vmatmul.mubr.msk.bf16.vlgmr.msra.gmra.mrb[44].mxu1 %vm339_vm4, %v1780_v24 }
0x1791   :  { %v3912_v26 = vpop.f32.mrb[36].mxu1 }
0x1792   :  { %v3914_v51 = vpop.f32.mrb[37].mxu1 }
0x1793   :  { %v3002_v27 = vpop.f32.mrb[38].mxu1 }
0x1794   :  { %v3916_v28 = vpop.f32.mrb[39].mxu1 }
0x1799   :  { %v3918_v29 = vpop.f32.mrb[40].mxu1 }
0x179a   :  { %v3920_v58 = vpop.f32.mrb[41].mxu1 }
0x179b   :  { %v3018_v30 = vpop.f32.mrb[42].mxu1 }
0x179c   :  { %v3922_v32 = vpop.f32.mrb[43].mxu1 }
0x179d   :  { %v3150_v33 = vpack.i.bf16 %v3922_v32, %v3920_v58 }
0x17ae   :  { %v3025_v35 = vpop.f32.mrb[44].mxu1 }
0x17af   :  { %v1831_v37 = vpop.f32.mrb[45].mxu1  ;;  %v1847_v41 = vmul.f32 0.35355338, %v3025_v35 }
0x17b0   :  { %v1845_v38 = vmul.f32 0.35355338, %v1831_v37  ;;  %v3026_v39 = vpop.f32.mrb[46].mxu1 }
0x17b1   :  { %v1834_v40 = vpop.f32.mrb[47].mxu1  ;;  %v1850_v47 = vadd.f32 %v1847_v41, %v3863_v2 }
0x17b2   :  { %v1846_v42 = vmul.f32 0.35355338, %v1834_v40  ;;  %v1848_v43 = vadd.f32 %v1845_v38, %v3852_v50 }
0x17b3   :  { %v1857_v48 = vsel %vm799_vm7, %v1850_v47, -inf }
0x17b4   :  { %v1851_v44 = vsel %vm799_vm7, %v1848_v43, -inf  ;;  %v1849_v45 = vadd.f32 %v1846_v42, %v3857_v60 }
0x17b5   :  { %1852 = vmax.xlane.f32.xlu1 %v1851_v44 }
0x17b6   :  { %v1854_v46 = vsel %vm799_vm7, %v1849_v45, -inf }
0x17b7   :  { %1855 = vmax.xlane.f32.xlu0 %v1854_v46 }
0x17bb   :  { %1858 = vmax.xlane.f32.xlu0 %v1857_v48 }
0x1842   :  { %v1853_v49 = vpop.xlane.xlu1 %1852 }
0x1843   :  { %v1860_v54 = vsub.f32 %v1848_v43, %v1853_v49 }
0x1844   :  { %v1856_v52 = vpop.xlane.xlu0 %1855 }
0x1845   :  { %v1861_v53 = vsub.f32 %v1849_v45, %v1856_v52  ;;  %v1863_v61 = vmul.f32 1.442695, %v1860_v54 }
0x1847   :  { %v1865_v55 = vmul.f32 1.442695, %v1861_v53 }
0x1848   :  { %v1859_v56 = vpop.xlane.xlu0 %1858 }
0x1849   :  { %3269 = vpow2.f32 %v1865_v55  ;;  %v1862_v57 = vsub.f32 %v1850_v47, %v1859_v56 }
0x184b   :  { %v1867_v62 = vmul.f32 1.442695, %v1862_v57 }
0x184d   :  { %3271 = vpow2.f32 %v1867_v62 }
0x184e   :  { %3273 = vpow2.f32 %v1863_v61 }
0x1853   :  { %v3270_v63 = vpop.eup %3269 }
0x1854   :  { %v1872_v1 = vsel %vm799_vm7, %v3270_v63, 0.0 }
0x1855   :  { %1873 = vadd.xlane.f32.xlu0 %v1872_v1 }
0x1857   :  { %v3272_v3 = vpop.eup %3271 }
0x1858   :  { %v1875_v5 = vsel %vm799_vm7, %v3272_v3, 0.0  ;;  %v3274_v6 = vpop.eup %3273 }
0x1859   :  { %1876 = vadd.xlane.f32.xlu1 %v1875_v5  ;;  %v1869_v7 = vsel %vm799_vm7, %v3274_v6, 0.0 }
0x185d   :  { %1870 = vadd.xlane.f32.xlu1 %v1869_v7 }
0x186b   :  { %1886 = vrot.lane.b32.xlu0 %v3823_v36, %s3357_s26 }
0x186e   :  { %1888 = vrot.lane.b32.xlu1 %v3819_v31, %s3357_s26 }
0x186f   :  { %1954 = vrot.lane.b32.xlu0 %v3819_v31, %s3354_s24 }
0x1872   :  { %1952 = vrot.lane.b32.xlu1 %v3823_v36, %s3354_s24 }
0x1873   :  { %1950 = vrot.lane.b32.xlu0 %v3819_v31, %s4179_s0 }
0x1876   :  { %1948 = vrot.lane.b32.xlu1 %v3823_v36, %s4179_s0 }
0x18e2   :  { %v1874_v8 = vpop.xlane.xlu0 %1873 }
0x18e6   :  { %v1877_v9 = vpop.xlane.xlu1 %1876  ;;  %v1887_v10 = vpop.permute.xlu0 %1886 }
0x18e7   :  { %3027 = vmatprep.subr.bf16.mxu0 %v1887_v10  ;;  %3275 = vrcp.f32 %v1877_v9 }
0x18e8   :  { %3028 = vmatpush3.bf16.msra.mxu0 %v1887_v10  ;;  %3277 = vrcp.f32 %v1874_v8 }
0x18ea   :  { %v1871_v11 = vpop.xlane.xlu1 %1870  ;;  %v1955_v24 = vpop.permute.xlu0 %1954 }
0x18eb   :  { %3279 = vrcp.f32 %v1871_v11  ;;  %v1966_v27 = vsel %vm339_vm4, %v1955_v24, 0 }
0x18ee   :  { %v1889_v12 = vpop.permute.xlu1 %1888  ;;  %v1951_v30 = vpop.permute.xlu0 %1950 }
0x18ef   :  { %v1898_v13 = vsel %vm226_vm1, %v1889_v12, 0  ;;  %3115 = vmatprep.subr.msk.bf16.mxu0 %vm226_vm1, %v1889_v12 }
0x18f0   :  { %3030 = vmatpush3.bf16.msra.mxu0 %v1898_v13 }
0x18f1   :  { %v3276_v14 = vpop.eup %3275 }
0x18f2   :  { %v1953_v34 = vpop.permute.xlu1 %1952  ;;  %v3278_v0 = vpop.eup %3277  ;;  %v1883_v59 = vmul.f32 %v3276_v14, %v3272_v3 }
0x18f3   :  { %3116 = vmatprep.subr.msk.bf16.mxu0 %vm339_vm4, %v1953_v34  ;;  %v1882_v18 = vmul.f32 %v3278_v0, %v3270_v63  ;;  %v1963_v22 = vsel %vm339_vm4, %v1953_v34, 0 }
0x18f4   :  { %v1885_v21 = vpack.c.bf16 %v1883_v59, %v1883_v59  ;;  %v3199_v59 = vld [vmem:[%s4146_s18] sm:$0xff]  }
0x18f5   :  { %v3280_v15 = vpop.eup %3279 }
0x18f6   :  { %v1881_v17 = vmul.f32 %v3280_v15, %v3274_v6  ;;  %v1949_v23 = vpop.permute.xlu1 %1948 }
0x18f8   :  { %v1884_v20 = vpack.c.bf16 %v1882_v18, %v1881_v17  ;;  %v3200_v17 = vld [vmem:[%s4146_s18 + $0x8] sm:$0xff]  }
0x18fa   :  { %3031 = vmatprep.mubr.msk.bf16.mxu0 %vm799_vm7, %v1884_v20 }
0x18fb   :  { %3032 = vmatmul.mubr.msk.bf16.vlgmr.msra.gmra.mrb[36].mxu0 %vm799_vm7, %v1885_v21 }
0x18fc   :  { %3036 = vmatpush3.bf16.xpose.msra.mxu0 %v1963_v22  ;;  %3039 = vmatprep.mubr.msk.bf16.mxu0 %vm339_vm4, %v1949_v23 }
0x18fd   :  { %3117 = vmatprep.subr.msk.bf16.mxu0 %vm339_vm4, %v1955_v24 }
0x1904   :  { %3038 = vmatpush3.bf16.xpose.msra.mxu0 %v1966_v27 }
0x190b   :  { %3040 = vmatmul.mubr.msk.bf16.vlgmr.msra.gmra.mrb[40].mxu0 %vm339_vm4, %v1951_v30 }
0x19ce   :  { %v3033_v35 = vpop.f32.mrb[36].mxu0 }
0x19cf   :  { %v1934_v37 = vpop.f32.mrb[37].mxu0 }
0x19d0   :  { %v3034_v38 = vpop.f32.mrb[38].mxu0 }
0x19d1   :  { %v1937_v39 = vpop.f32.mrb[39].mxu0 }
0x19d2   :  { %v3155_v40 = vpack.i.bf16 %v1937_v39, %v1934_v37 }
0x19de   :  { %v3041_v41 = vpop.f32.mrb[40].mxu0 }
0x19df   :  { %v2002_v42 = vpop.f32.mrb[41].mxu0  ;;  %v2018_v46 = vmul.f32 0.35355338, %v3041_v41 }
0x19e0   :  { %v2016_v43 = vmul.f32 0.35355338, %v2002_v42  ;;  %v3042_v44 = vpop.f32.mrb[42].mxu0 }
0x19e1   :  { %v2005_v45 = vpop.f32.mrb[43].mxu0  ;;  %v2021_v54 = vadd.f32 %v2018_v46, %v3863_v2 }
0x19e2   :  { %v2017_v47 = vmul.f32 0.35355338, %v2005_v45  ;;  %v2019_v48 = vadd.f32 %v2016_v43, %v3852_v50 }
0x19e3   :  { %v2028_v55 = vsel %vm799_vm7, %v2021_v54, -inf }
0x19e4   :  { %v2022_v49 = vsel %vm799_vm7, %v2019_v48, -inf  ;;  %v2020_v52 = vadd.f32 %v2017_v47, %v3857_v60 }
0x19e5   :  { %2023 = vmax.xlane.f32.xlu1 %v2022_v49 }
0x19e6   :  { %v2025_v53 = vsel %vm799_vm7, %v2020_v52, -inf }
0x19e7   :  { %2026 = vmax.xlane.f32.xlu0 %v2025_v53 }
0x19eb   :  { %2029 = vmax.xlane.f32.xlu0 %v2028_v55 }
0x1a72   :  { %v2024_v56 = vpop.xlane.xlu1 %2023 }
0x1a73   :  { %v2031_v62 = vsub.f32 %v2019_v48, %v2024_v56 }
0x1a74   :  { %v2027_v57 = vpop.xlane.xlu0 %2026 }
0x1a75   :  { %v2032_v61 = vsub.f32 %v2020_v52, %v2027_v57  ;;  %v2034_v3 = vmul.f32 1.442695, %v2031_v62 }
0x1a77   :  { %v2036_v63 = vmul.f32 1.442695, %v2032_v61 }
0x1a78   :  { %v2030_v1 = vpop.xlane.xlu0 %2029 }
0x1a79   :  { %3281 = vpow2.f32 %v2036_v63  ;;  %v2033_v50 = vsub.f32 %v2021_v54, %v2030_v1 }
0x1a7b   :  { %v2038_v5 = vmul.f32 1.442695, %v2033_v50 }
0x1a7d   :  { %3283 = vpow2.f32 %v2038_v5 }
0x1a7e   :  { %3285 = vpow2.f32 %v2034_v3 }
0x1a83   :  { %v3282_v60 = vpop.eup %3281 }
0x1a84   :  { %v2043_v6 = vsel %vm799_vm7, %v3282_v60, 0.0 }
0x1a85   :  { %2044 = vadd.xlane.f32.xlu0 %v2043_v6  ;;  %v3202_v6 = vld [vmem:[%s4148_s20] sm:$0xff]  }
0x1a87   :  { %v3284_v2 = vpop.eup %3283 }
0x1a88   :  { %v2046_v7 = vsel %vm799_vm7, %v3284_v2, 0.0  ;;  %v3286_v8 = vpop.eup %3285 }
0x1a89   :  { %2047 = vadd.xlane.f32.xlu1 %v2046_v7  ;;  %v2040_v9 = vsel %vm799_vm7, %v3286_v8, 0.0  ;;  %v3204_v7 = vld [vmem:[%s4148_s20 + $0x8] sm:$0xff]  }
0x1a8d   :  { %2041 = vadd.xlane.f32.xlu1 %v2040_v9 }
0x1a9b   :  { %2057 = vrot.lane.b32.xlu0 %v3823_v36, %s4180_s29 }
0x1a9e   :  { %2059 = vrot.lane.b32.xlu1 %v3819_v31, %s4180_s29 }
0x1a9f   :  { %2126 = vrot.lane.b32.xlu0 %v3918_v29, %s4181_s2 }
0x1aa2   :  { %3151 = vrot.lane.b32.xlu1 %v3150_v33, %s4181_s2 }
0x1aa3   :  { %2138 = vrot.lane.b32.xlu0 %v3033_v35, %s3359_s25 }
0x1aa6   :  { %3156 = vrot.lane.b32.xlu1 %v3155_v40, %s3359_s25 }
0x1b12   :  { %v2045_v10 = vpop.xlane.xlu0 %2044 }
0x1b16   :  { %v2048_v11 = vpop.xlane.xlu1 %2047  ;;  %v2058_v12 = vpop.permute.xlu0 %2057 }
0x1b17   :  { %3043 = vmatprep.subr.bf16.mxu1 %v2058_v12  ;;  %3287 = vrcp.f32 %v2048_v11 }
0x1b18   :  { %3044 = vmatpush3.bf16.msra.mxu1 %v2058_v12  ;;  %3289 = vrcp.f32 %v2045_v10 }
0x1b1a   :  { %v2042_v31 = vpop.xlane.xlu1 %2041  ;;  %v2127_v24 = vpop.permute.xlu0 %2126 }
0x1b1b   :  { %3291 = vrcp.f32 %v2042_v31  ;;  %v2157_v41 = vsel %vm339_vm4, %v3912_v26, %v2127_v24 }
0x1b1e   :  { %v2060_v36 = vpop.permute.xlu1 %2059  ;;  %v2139_v30 = vpop.permute.xlu0 %2138 }
0x1b1f   :  { %v2069_v29 = vsel %vm226_vm1, %v2060_v36, 0  ;;  %3118 = vmatprep.subr.msk.bf16.mxu1 %vm226_vm1, %v2060_v36  ;;  %v2160_v43 = vsel %vm797_vm6, %v2157_v41, %v2139_v30  ;;  %v3206_v30 = vld [vmem:[%s4149_s21 + $0x8] sm:$0xff]  }
0x1b20   :  { %3046 = vmatpush3.bf16.msra.mxu1 %v2069_v29 }
0x1b21   :  { %v3288_v58 = vpop.eup %3287  ;;  %3051 = vmatprep.subr.bf16.mxu1 %v3199_v59 }
0x1b22   :  { %v3290_v32 = vpop.eup %3289  ;;  %v2054_v13 = vmul.f32 %v3288_v58, %v3284_v2  ;;  %v3152_v27 = vpop.permute.xlu1 %3151  ;;  %v3203_v2 = vld [vmem:[%s4147_s19 + $0x8] sm:$0xff]  }
0x1b23   :  { %v2053_v34 = vmul.f32 %v3290_v32, %v3282_v60  ;;  %v3154_v37 = vunpack.i.h.bf16 %v3152_v27  ;;  %v3153_v38 = vunpack.i.l.bf16 %v3152_v27  ;;  %v3205_v27 = vld [vmem:[%s4149_s21] sm:$0xff]  }
0x1b24   :  { %v2056_v15 = vpack.c.bf16 %v2054_v13, %v2054_v13 }
0x1b25   :  { %v3292_v33 = vpop.eup %3291  ;;  %v2156_v45 = vsel %vm339_vm4, %v3916_v28, %v3154_v37  ;;  %v2155_v46 = vsel %vm339_vm4, %v3914_v51, %v3153_v38  ;;  %v3208_v37 = vld [vmem:[%s4149_s21 + $0x18] sm:$0xff]  }
0x1b26   :  { %v2052_v14 = vmul.f32 %v3292_v33, %v3286_v8  ;;  %v3157_v35 = vpop.permute.xlu1 %3156  ;;  %v4037_v8 = vld [vmem:[%s4143_s15] sm:$0xff]  }
0x1b27   :  { %v3159_v39 = vunpack.i.h.bf16 %v3157_v35  ;;  %v3158_v40 = vunpack.i.l.bf16 %v3157_v35  ;;  %v2235_v33 = vld [vmem:[%s4144_s16 + $0x3] sm:$0x1]  ;;  %v3207_v35 = vld [vmem:[%s4149_s21 + $0x10] sm:$0xff]  }
0x1b28   :  { %v2055_v0 = vpack.c.bf16 %v2053_v34, %v2052_v14  ;;  %v2260_v13 = vadd.f32 1.0, %v2235_v33  ;;  %v3312_v33 = vld [vmem:[%s4143_s15 + $0x8] sm:$0xff]  }
0x1b29   :  { %v2158_v49 = vsel %vm797_vm6, %v2155_v46, %v3158_v40  ;;  %v2159_v52 = vsel %vm797_vm6, %v2156_v45, %v3159_v39 }
0x1b2a   :  { %3047 = vmatprep.mubr.msk.bf16.mxu1 %vm799_vm7, %v2055_v0  ;;  %v2264_v0 = vrot.slane %v2260_v13, %v3811_v16  ;;  %v2570_v13 = vsel %vm239_vm2, %v3312_v33, 0 }
0x1b2b   :  { %3048 = vmatmul.mubr.msk.bf16.vlgmr.msra.gmra.mrb[48].mxu1 %vm799_vm7, %v2056_v15 }
0x1b2c   :  { %3052 = vmatpush3.bf16.msra.mxu1 %v3199_v59 }
0x1b2d   :  { %3053 = vmatprep.subr.bf16.mxu1 %v3200_v17 }
0x1b30   :  { %3054 = vmatpush3.bf16.msra.mxu1 %v3200_v17 }
0x1b31   :  { %3067 = vmatprep.subr.bf16.mxu1 %v3202_v6 }
0x1bfe   :  { %v3049_v18 = vpop.f32.mrb[48].mxu1 }
0x1bff   :  { %2150 = vrot.lane.b32.xlu0 %v3049_v18, %s4182_s14  ;;  %v2105_v20 = vpop.f32.mrb[49].mxu1 }
0x1c00   :  { %v3050_v21 = vpop.f32.mrb[50].mxu1 }
0x1c01   :  { %v2108_v22 = vpop.f32.mrb[51].mxu1 }
0x1c02   :  { %v3160_v23 = vpack.i.bf16 %v2108_v22, %v2105_v20 }
0x1c04   :  { %3161 = vrot.lane.b32.xlu1 %v3160_v23, %s4182_s14 }
0x1c71   :  { %v2151_v42 = vpop.permute.xlu0 %2150 }
0x1c72   :  { %v2163_v53 = vsel %vm799_vm7, %v2160_v43, %v2151_v42 }
0x1c73   :  { %v2165_v56 = vpack.c.bf16 %v2163_v53, %v2163_v53 }
0x1c76   :  { %v3162_v44 = vpop.permute.xlu1 %3161 }
0x1c77   :  { %v3164_v47 = vunpack.i.h.bf16 %v3162_v44  ;;  %v3163_v48 = vunpack.i.l.bf16 %v3162_v44 }
0x1c79   :  { %v2162_v26 = vsel %vm799_vm7, %v2159_v52, %v3164_v47  ;;  %v2161_v54 = vsel %vm799_vm7, %v2158_v49, %v3163_v48 }
0x1c7a   :  { %v2164_v55 = vpack.c.bf16 %v2162_v26, %v2161_v54 }
0x1c7c   :  { %3055 = vmatprep.mubr.msk.bf16.mxu1 %vm239_vm2, %v2164_v55 }
0x1c7d   :  { %3056 = vmatmul.mubr.msk.bf16.vlgmr.msra.gmra.mrb[52].mxu1 %vm239_vm2, %v2165_v56 }
0x1c7e   :  { %3068 = vmatpush3.bf16.msra.mxu1 %v3202_v6 }
0x1c7f   :  { %3069 = vmatprep.subr.bf16.mxu1 %v3204_v7 }
0x1c82   :  { %3070 = vmatpush3.bf16.msra.mxu1 %v3204_v7 }
0x1c83   :  { %3119 = vmatprep.subr.msk.bf16.mxu1 %vm239_vm2, %v4037_v8 }
0x1d50   :  { %v3057_v28 = vpop.f32.mrb[52].mxu1 }
0x1d51   :  { %v2218_v51 = vpop.f32.mrb[53].mxu1  ;;  %v4008_v63 = vadd.f32 %v3057_v28, %v3796_v4 }
0x1d52   :  { %v4005_v57 = vadd.f32 %v2218_v51, %v3786_v19  ;;  %v3058_v61 = vpop.f32.mrb[54].mxu1 }
0x1d53   :  { %v2221_v62 = vpop.f32.mrb[55].mxu1  ;;  %v2238_v60 = vmul.f32 %v4008_v63, %v4008_v63 }
0x1d54   :  { %v4011_v1 = vadd.f32 %v2221_v62, %v3791_v25  ;;  %v2236_v50 = vmul.f32 %v4005_v57, %v4005_v57  ;;  %v3201_v25 = vld [vmem:[%s4147_s19] sm:$0xff]  }
0x1d55   :  { %v2245_v4 = vsel %vm239_vm2, %v2238_v60, 0.0  ;;  %3059 = vmatprep.subr.bf16.mxu0 %v3201_v25 }
0x1d56   :  { %v2239_v3 = vsel %vm239_vm2, %v2236_v50, 0.0  ;;  %v2237_v5 = vmul.f32 %v4011_v1, %v4011_v1  ;;  %3060 = vmatpush3.bf16.msra.mxu0 %v3201_v25 }
0x1d57   :  { %2240 = vadd.xlane.f32.xlu1 %v2239_v3  ;;  %3061 = vmatprep.subr.bf16.mxu0 %v3203_v2 }
0x1d58   :  { %v2242_v19 = vsel %vm239_vm2, %v2237_v5, 0.0 }
0x1d59   :  { %2243 = vadd.xlane.f32.xlu0 %v2242_v19 }
0x1d5a   :  { %3062 = vmatpush3.bf16.msra.mxu0 %v3203_v2 }
0x1d5b   :  { %3075 = vmatprep.subr.bf16.mxu0 %v3205_v27 }
0x1d5d   :  { %2246 = vadd.xlane.f32.xlu0 %v2245_v4 }
0x1de4   :  { %v2241_v9 = vpop.xlane.xlu1 %2240 }
0x1de5   :  { %v2248_v10 = vmul.f32 0.03125, %v2241_v9 }
0x1de6   :  { %v2244_v11 = vpop.xlane.xlu0 %2243 }
0x1de7   :  { %v2251_v12 = vadd.f32 1e-06, %v2248_v10  ;;  %v2249_v31 = vmul.f32 0.03125, %v2244_v11 }
0x1de9   :  { %3293 = vrsqrt.f32 %v2251_v12  ;;  %v2252_v36 = vadd.f32 1e-06, %v2249_v31 }
0x1dea   :  { %v2247_v29 = vpop.xlane.xlu0 %2246 }
0x1deb   :  { %3295 = vrsqrt.f32 %v2252_v36  ;;  %v2250_v58 = vmul.f32 0.03125, %v2247_v29 }
0x1ded   :  { %v2253_v32 = vadd.f32 1e-06, %v2250_v58 }
0x1def   :  { %3297 = vrsqrt.f32 %v2253_v32  ;;  %v2567_v32 = vsel %vm239_vm2, %v4037_v8, 0  ;;  %v3314_v8 = vld [vmem:[%s4143_s15 + $0x18] sm:$0xff]  }
0x1df3   :  { %v3294_v14 = vpop.eup %3293 }
0x1df4   :  { %v2257_v34 = vmul.f32 %v3294_v14, %v4005_v57  ;;  %v3313_v14 = vld [vmem:[%s4143_s15 + $0x10] sm:$0xff]  }
0x1df5   :  { %v3296_v15 = vpop.eup %3295 }
0x1df6   :  { %v2258_v59 = vmul.f32 %v3296_v15, %v4011_v1  ;;  %v2265_v17 = vmul.f32 %v2264_v0, %v2257_v34  ;;  %v2573_v34 = vsel %vm239_vm2, %v3313_v14, 0  ;;  %v3315_v15 = vld [vmem:[%s4143_s15 + $0x20] sm:$0xff]  }
0x1df8   :  { %v2266_v18 = vmul.f32 %v2264_v0, %v2258_v59  ;;  %v2579_v59 = vsel %vm239_vm2, %v3315_v15, 0 }
0x1df9   :  { %v3298_v20 = vpop.eup %3297 }
0x1dfa   :  { %v2259_v21 = vmul.f32 %v3298_v20, %v4008_v63  ;;  %v2272_v22 = vpack.c.bf16 %v2266_v18, %v2265_v17  ;;  %v3316_v17 = vld [vmem:[%s4143_s15 + $0x28] sm:$0xff]  }
0x1dfc   :  { %3063 = vmatprep.mubr.msk.bf16.mxu0 %vm239_vm2, %v2272_v22  ;;  %3071 = vmatprep.mubr.msk.bf16.mxu1 %vm239_vm2, %v2272_v22  ;;  %v2267_v23 = vmul.f32 %v2264_v0, %v2259_v21  ;;  %v2576_v0 = vsel %vm239_vm2, %v3314_v8, 0 }
0x1dfe   :  { %v2273_v24 = vpack.c.bf16 %v2267_v23, %v2267_v23 }
0x1e00   :  { %3064 = vmatmul.mubr.msk.bf16.vlgmr.msra.gmra.mrb[44].mxu0 %vm239_vm2, %v2273_v24  ;;  %3072 = vmatmul.mubr.msk.bf16.vlgmr.msra.gmra.mrb[56].mxu1 %vm239_vm2, %v2273_v24 }
0x1e01   :  { %3076 = vmatpush3.bf16.msra.mxu0 %v3205_v27  ;;  %3088 = vmatpush3.bf16.xpose.msra.mxu1 %v2567_v32 }
0x1e02   :  { %3077 = vmatprep.subr.bf16.mxu0 %v3206_v30  ;;  %3120 = vmatprep.subr.msk.bf16.mxu1 %vm239_vm2, %v3312_v33 }
0x1e05   :  { %3078 = vmatpush3.bf16.msra.mxu0 %v3206_v30 }
0x1e06   :  { %3079 = vmatprep.subr.bf16.mxu0 %v3207_v35 }
0x1e09   :  { %3080 = vmatpush3.bf16.msra.mxu0 %v3207_v35  ;;  %3090 = vmatpush3.bf16.xpose.msra.mxu1 %v2570_v13 }
0x1e0a   :  { %3081 = vmatprep.subr.bf16.mxu0 %v3208_v37  ;;  %3121 = vmatprep.subr.msk.bf16.mxu1 %vm239_vm2, %v3313_v14 }
0x1e0d   :  { %3082 = vmatpush3.bf16.msra.mxu0 %v3208_v37 }
0x1e11   :  { %3092 = vmatpush3.bf16.xpose.msra.mxu1 %v2573_v34 }
0x1e12   :  { %3122 = vmatprep.subr.msk.bf16.mxu1 %vm239_vm2, %v3314_v8 }
0x1e19   :  { %3094 = vmatpush3.bf16.xpose.msra.mxu1 %v2576_v0 }
0x1e1a   :  { %3123 = vmatprep.subr.msk.bf16.mxu1 %vm239_vm2, %v3315_v15 }
0x1e21   :  { %3096 = vmatpush3.bf16.xpose.msra.mxu1 %v2579_v59 }
0x1e22   :  { %3124 = vmatprep.subr.msk.bf16.mxu1 %vm239_vm2, %v3316_v17 }
0x1ed3   :  { %v3065_v38 = vpop.f32.mrb[44].mxu0  ;;  %v3073_v39 = vpop.f32.mrb[56].mxu1 }
0x1ed4   :  { %v2342_v40 = vmul.f32 %v3065_v38, %v3065_v38  ;;  %v2326_v41 = vpop.f32.mrb[45].mxu0  ;;  %v2417_v42 = vpop.f32.mrb[57].mxu1 }
0x1ed5   :  { %v2340_v43 = vmul.f32 %v2326_v41, %v2326_v41  ;;  %v3066_v44 = vpop.f32.mrb[46].mxu0  ;;  %v3074_v45 = vpop.f32.mrb[58].mxu1 }
0x1ed6   :  { %v2345_v46 = vmul.f32 %v3065_v38, %v2342_v40  ;;  %v2329_v47 = vpop.f32.mrb[47].mxu0  ;;  %v2420_v48 = vpop.f32.mrb[59].mxu1 }
0x1ed7   :  { %v2343_v49 = vmul.f32 %v2340_v43, %v2326_v41  ;;  %v2341_v52 = vmul.f32 %v2329_v47, %v2329_v47 }
0x1ed8   :  { %v2348_v53 = vmul.f32 0.044715, %v2345_v46 }
0x1ed9   :  { %v2346_v26 = vmul.f32 0.044715, %v2343_v49  ;;  %v2344_v54 = vmul.f32 %v2341_v52, %v2329_v47 }
0x1eda   :  { %v2351_v55 = vadd.f32 %v3065_v38, %v2348_v53 }
0x1edb   :  { %v2349_v56 = vadd.f32 %v2346_v26, %v2326_v41  ;;  %v2347_v28 = vmul.f32 0.044715, %v2344_v54  ;;  %v2525_v26 = vld [vmem:[%s4144_s16 + $0x4] sm:$0x1] }
0x1edc   :  { %v2354_v51 = vmul.f32 0.7978846, %v2351_v55  ;;  %v2550_v54 = vadd.f32 1.0, %v2525_v26 }
0x1edd   :  { %v2352_v61 = vmul.f32 0.7978846, %v2349_v56  ;;  %v2350_v62 = vadd.f32 %v2347_v28, %v2329_v47 }
0x1ede   :  { %3299 = vtanh.f32 %v2354_v51  ;;  %v2554_v28 = vrot.slane %v2550_v54, %v3811_v16 }
0x1edf   :  { %3301 = vtanh.f32 %v2352_v61  ;;  %v2353_v50 = vmul.f32 0.7978846, %v2350_v62 }
0x1ee1   :  { %3303 = vtanh.f32 %v2353_v50 }
0x1ee8   :  { %v3300_v3 = vpop.eup %3299 }
0x1ee9   :  { %v3302_v5 = vpop.eup %3301  ;;  %v2360_v19 = vadd.f32 1.0, %v3300_v3 }
0x1eea   :  { %v2358_v60 = vadd.f32 1.0, %v3302_v5 }
0x1eeb   :  { %v3304_v4 = vpop.eup %3303  ;;  %v2363_v25 = vmul.f32 0.5, %v2360_v19 }
0x1eec   :  { %v2361_v6 = vmul.f32 0.5, %v2358_v60  ;;  %v2359_v2 = vadd.f32 1.0, %v3304_v4 }
0x1eed   :  { %v2366_v7 = vmul.f32 %v3065_v38, %v2363_v25 }
0x1eee   :  { %v2364_v9 = vmul.f32 %v2361_v6, %v2326_v41  ;;  %v2362_v10 = vmul.f32 0.5, %v2359_v2  ;;  %v3318_v41 = vld [vmem:[%s4143_s15 + $0x38] sm:$0xff]  }
0x1eef   :  { %v2433_v11 = vmul.f32 %v3073_v39, %v2366_v7 }
0x1ef0   :  { %v2431_v12 = vmul.f32 %v2417_v42, %v2364_v9  ;;  %v2365_v31 = vmul.f32 %v2362_v10, %v2329_v47  ;;  %v2588_v42 = vsel %vm239_vm2, %v3318_v41, 0 }
0x1ef1   :  { %v2443_v58 = vpack.c.bf16 %v2433_v11, %v2433_v11 }
0x1ef2   :  { %v2432_v36 = vmul.f32 %v2420_v48, %v2365_v31 }
0x1ef4   :  { %v2442_v29 = vpack.c.bf16 %v2432_v36, %v2431_v12 }
0x1ef6   :  { %3083 = vmatprep.mubr.msk.bf16.mxu0 %vm178_vm0, %v2442_v29 }
0x1ef7   :  { %3084 = vmatmul.mubr.msk.bf16.vlgmr.msra.gmra.mrb[48].mxu0 %vm178_vm0, %v2443_v58 }
0x1fca   :  { %v3085_v18 = vpop.f32.mrb[48].mxu0 }
0x1fcb   :  { %v2508_v20 = vpop.f32.mrb[49].mxu0  ;;  %v2524_v21 = vadd.f32 %v3085_v18, %v4008_v63  ;;  %v2582_v63 = vsel %vm239_vm2, %v3316_v17, 0 }
0x1fcc   :  { %v2522_v22 = vadd.f32 %v2508_v20, %v4005_v57  ;;  %v3086_v23 = vpop.f32.mrb[50].mxu0  ;;  %3098 = vmatpush3.bf16.xpose.msra.mxu1 %v2582_v63  ;;  %v3317_v57 = vld [vmem:[%s4143_s15 + $0x30] sm:$0xff]   ;;  %s3362_s15 = smov [#allocation2]  }
0x1fcd   :  { %v2511_v24 = vpop.f32.mrb[51].mxu0  ;;  %v2528_v35 = vmul.f32 %v2524_v21, %v2524_v21  ;;  %3125 = vmatprep.subr.msk.bf16.mxu1 %vm239_vm2, %v3317_v57  ;;  %s2646_s16 = sshll.u32 %s3362_s15, 4  ;;  %s2647_s16 = int_to_ptr.vmem [resolvable:$true] %s2646_s16 }
0x1fce   :  { %v2526_v27 = vmul.f32 %v2522_v22, %v2522_v22  ;;  %v2523_v30 = vadd.f32 %v2511_v24, %v4011_v1  ;;  %v2585_v1 = vsel %vm239_vm2, %v3317_v57, 0  ;;  %s3319_s30 = scalar_lea.vmem %s2647_s16, 384  ;;  %p3324_p1 = scmp.lt.s32.totalorder %s2647_s16, %s2647_s16 }
0x1fcf   :  { %v2535_v40 = vsel %vm239_vm2, %v2528_v35, 0.0  ;;  %p3320_p0 = scmp.ne.s32.totalorder %s2647_s16, %s3319_s30  ;;  %p3325_p2 = scmp.lt.s32.totalorder %s3319_s30, %s3319_s30 }
0x1fd0   :  { %v2529_v37 = vsel %vm239_vm2, %v2526_v27, 0.0  ;;  %v2527_v38 = vmul.f32 %v2523_v30, %v2523_v30 }
0x1fd1   :  { %2530 = vadd.xlane.f32.xlu1 %v2529_v37  ;;  %p3326_p3 = por %p3325_p2, %p3324_p1 }
0x1fd2   :  { %v2532_v39 = vsel %vm239_vm2, %v2527_v38, 0.0 }
0x1fd3   :  { %2533 = vadd.xlane.f32.xlu0 %v2532_v39  ;;  %p3327_p4 = pnand %p3326_p3, %p3320_p0 }
0x1fd4   :  { %3100 = vmatpush3.bf16.xpose.msra.mxu1 %v2585_v1 }
0x1fd5   :  { %2536 = vadd.xlane.f32.xlu1 %v2535_v40  ;;  %3126 = vmatprep.subr.msk.bf16.mxu1 %vm239_vm2, %v3318_v41 }
0x1fdc   :  { %3102 = vmatpush3.bf16.xpose.msra.mxu1 %v2588_v42 }
0x205e   :  { %v2531_v43 = vpop.xlane.xlu1 %2530 }
0x205f   :  { %v2538_v44 = vmul.f32 0.03125, %v2531_v43 }
0x2060   :  { %v2534_v45 = vpop.xlane.xlu0 %2533 }
0x2061   :  { %v2541_v46 = vadd.f32 1e-06, %v2538_v44  ;;  %v2539_v47 = vmul.f32 0.03125, %v2534_v45 }
0x2062   :  { %v2537_v48 = vpop.xlane.xlu1 %2536 }
0x2063   :  { %3305 = vrsqrt.f32 %v2541_v46  ;;  %v2542_v49 = vadd.f32 1e-06, %v2539_v47  ;;  %v2540_v52 = vmul.f32 0.03125, %v2537_v48 }
0x2065   :  { %3307 = vrsqrt.f32 %v2542_v49  ;;  %v2543_v53 = vadd.f32 1e-06, %v2540_v52 }
0x2067   :  { %3309 = vrsqrt.f32 %v2543_v53 }
0x206d   :  { %v3306_v55 = vpop.eup %3305 }
0x206e   :  { %v2547_v56 = vmul.f32 %v3306_v55, %v2522_v22 }
0x206f   :  { %v3308_v51 = vpop.eup %3307 }
0x2070   :  { %v2548_v61 = vmul.f32 %v3308_v51, %v2523_v30  ;;  %v2555_v3 = vmul.f32 %v2554_v28, %v2547_v56 }
0x2071   :  { %v3310_v62 = vpop.eup %3309 }
0x2072   :  { %v2549_v50 = vmul.f32 %v3310_v62, %v2524_v21  ;;  %v2556_v5 = vmul.f32 %v2554_v28, %v2548_v61 }
0x2074   :  { %v2558_v19 = vpack.c.bf16 %v2556_v5, %v2555_v3  ;;  %v2557_v60 = vmul.f32 %v2554_v28, %v2549_v50 }
0x2076   :  { %3103 = vmatprep.mubr.msk.bf16.mxu1 %vm239_vm2, %v2558_v19  ;;  %v2559_v4 = vpack.c.bf16 %v2557_v60, %v2557_v60 }
0x2078   :  { %3104 = vmatmul.mubr.msk.bf16.vlgmr.msra.gmra.mrb[60].mxu1 %vm239_vm2, %v2559_v4 }
0x214b   :  { %v3105_v25 = vpop.f32.mrb[60].mxu1 }
0x214c   :  { %2640 = vst [vmem:[#allocation2 + $0x10] sm:$0xff] %v3105_v25  ;;  %v2624_v6 = vpop.f32.mrb[61].mxu1 }
0x214d   :  { %2638 = vst [vmem:[#allocation2] sm:$0xff] %v2624_v6  ;;  %v3106_v16 = vpop.f32.mrb[62].mxu1 }
0x214e   :  { %v2627_v2 = vpop.f32.mrb[63].mxu1 }
0x214f   :  { %2639 = vst [vmem:[#allocation2 + $0x8] sm:$0xff] %v2627_v2 }
0x2150   :  { %3330 = shalt.err (!%p3327_p4)
}
0x2151   :  { %s3331_s17 = scalar_lea.hbm %s4150_s22, 384 }
0x2152   :  { %p3332_p5 = scmp.ne.s32.totalorder %s4150_s22, %s3331_s17  ;;  %p3335_p6 = scmp.lt.u32.totalorder %s3331_s17, %s4150_s22 }
0x2154   :  { %p3337_p7 = pnand %p3335_p6, %p3332_p5 }
0x2156   :  { %3340 = shalt.err (!%p3337_p7)
}
0x2157   :  { %s3363_s27 = smov 128  }
0x2158   :  { %2652 = dma.vmem_to_hbm [thread:$0]  %s2647_s16, 384, %s4150_s22, [#allocation3], %s3363_s27, %s3363_s27, %s4181_s2  }
0x2159   :  { %3341 = dma.done.wait [#allocation3], 384  }
0x215a   :  { %3342 = vsyncadd [#allocation3], 4294966912 }
0x215b   :  { %2656 = vsyncpa [#allocation3], 1 }

</bundles_post_ra>
